<compile_context>
chip_gen: v7x
topology: tpu7x:2x2x1
jax: 0.10.0
libtpu: 0.0.40
codegen_flags: <defaults>
</compile_context>

<pallas_src>
import functools

import jax
import jax.numpy as jnp
from jax import lax
from jax.experimental import pallas as pl
from jax.experimental.pallas import tpu as pltpu


_VMEM_LIMIT = 64 * 1024 * 1024  # fits v5e/v6e physical; == v7x physical VMEM


# ---------------------------------------------------------------------------
# Tile-size helpers: return a divisor of `dim` that respects the (8, 128)
# block constraints, or the full dim (always legal) for small/odd sizes.
# TODO(synk): for large dims with no nice divisor this falls back to the full
# dimension (VMEM risk); padding / masked-tail grids would be the general fix.
# ---------------------------------------------------------------------------
def _row_tile(dim, pref=256):
    if dim <= pref:
        return dim
    t = pref
    while t >= 8:
        if dim % t == 0:
            return t
        t -= 8
    return dim


def _col_tile(dim, pref=512):
    if dim <= pref:
        return dim
    t = pref
    while t >= 128:
        if dim % t == 0:
            return t
        t -= 128
    return dim


# ---------------------------------------------------------------------------
# Kernel 1: fused QKV projection + head-axis attention.
#   grid   : (batch N, seq tiles)
#   in     : x (TS, M), w_qkv (M, 3M) resident, b_qkv (1, 3M)
#   out    : ctx (H, TS, Dh)  -- already in the reference einsum's 'nqhd'
#            (N, H, S, Dh) order, so no transpose is needed afterwards; its
#            raw flatten to (N*S, M) IS the reference's reshape.
# The QKV projection runs on the MXU; the tiny HxH head-axis attention runs
# entirely on the VPU (broadcast-multiply + lane reductions, statically
# unrolled over the small head axis, exact f32 divide for the softmax).
# The 1/sqrt(Dh) scale is pre-folded into the Q slice of w_qkv / b_qkv.
# ---------------------------------------------------------------------------
def _qkv_head_attn_kernel(x_ref, w_ref, b_ref, o_ref, *, H, Dh):
    M = H * Dh
    qkv = jnp.dot(x_ref[...], w_ref[...],
                  preferred_element_type=jnp.float32) + b_ref[...]   # (TS, 3M)

    # Head-major query stack (H, TS, Dh); scale already folded into Q weights.
    q = jnp.stack([qkv[:, i * Dh:(i + 1) * Dh] for i in range(H)], axis=0)
    k = [qkv[:, M + j * Dh: M + (j + 1) * Dh] for j in range(H)]      # (TS, Dh)
    v = [qkv[:, 2 * M + j * Dh: 2 * M + (j + 1) * Dh] for j in range(H)]

    # energy_j[i, s] = <q_i[s, :], k_j[s, :]>  (HxH attention per position)
    energy = [jnp.sum(q * kj[None, :, :], axis=-1, keepdims=True) for kj in k]
    m = functools.reduce(jnp.maximum, energy)                         # (H, TS, 1)
    e = [jnp.exp(en - m) for en in energy]
    denom = functools.reduce(jnp.add, e)
    inv = 1.0 / denom                                                 # exact divide

    # ctx[i, s, d] = sum_j softmax_j(energy)[i, j, s] * v_j[s, d]
    ctx = functools.reduce(
        jnp.add, [(e[j] * inv) * v[j][None, :, :] for j in range(H)])  # (H, TS, Dh)
    o_ref[...] = ctx.astype(o_ref.dtype)


def fused_qkv_head_attention(x3d, w_qkv, b_qkv, *, num_heads):
    N, S, M = x3d.shape
    H = num_heads
    Dh = M // H
    TS = _row_tile(S, 128)
    kernel = functools.partial(_qkv_head_attn_kernel, H=H, Dh=Dh)
    return pl.pallas_call(
        kernel,
        out_shape=jax.ShapeDtypeStruct((N, H, S, Dh), jnp.float32),
        grid=(N, S // TS),
        in_specs=[
            pl.BlockSpec((None, TS, M), lambda n, s: (n, s, 0)),
            pl.BlockSpec((M, 3 * M), lambda n, s: (0, 0)),
            pl.BlockSpec((1, 3 * M), lambda n, s: (0, 0)),
        ],
        out_specs=pl.BlockSpec((None, H, TS, Dh), lambda n, s: (n, 0, s, 0)),
        compiler_params=pltpu.CompilerParams(
            dimension_semantics=("parallel", "parallel"),
            vmem_limit_bytes=_VMEM_LIMIT),
    )(x3d, w_qkv, b_qkv.reshape(1, -1))


# ---------------------------------------------------------------------------
# Kernel 2: tiled linear  o = act(x @ w + b), grid=(R/tm, N/tn, K/tk).
# The output block is resident across k (index_map ignores k), so it is used
# directly as the f32 accumulator (no VMEM scratch). Bias / activation applied
# in the k==last epilogue.
# ---------------------------------------------------------------------------
def _linear_kernel(x_ref, w_ref, b_ref, o_ref, *, activation):
    k = pl.program_id(2)

    @pl.when(k == 0)
    def _():
        o_ref[...] = jnp.zeros_like(o_ref)

    o_ref[...] += jnp.dot(x_ref[...], w_ref[...],
                          preferred_element_type=jnp.float32)

    @pl.when(k == pl.num_programs(2) - 1)
    def _():
        r = o_ref[...] + b_ref[...]
        if activation == "relu":
            r = jnp.maximum(r, 0.0)
        o_ref[...] = r


def pallas_linear(x2d, w, b, *, activation=None):
    R, K = x2d.shape
    _, Nout = w.shape
    tm = _row_tile(R, 256)
    tn = _col_tile(Nout, 512)
    tk = _col_tile(K, 512)
    kernel = functools.partial(_linear_kernel, activation=activation)
    return pl.pallas_call(
        kernel,
        out_shape=jax.ShapeDtypeStruct((R, Nout), jnp.float32),
        grid=(R // tm, Nout // tn, K // tk),
        in_specs=[
            pl.BlockSpec((tm, tk), lambda i, j, k: (i, k)),
            pl.BlockSpec((tk, tn), lambda i, j, k: (k, j)),
            pl.BlockSpec((1, tn), lambda i, j, k: (0, j)),
        ],
        out_specs=pl.BlockSpec((tm, tn), lambda i, j, k: (i, j)),
        compiler_params=pltpu.CompilerParams(
            dimension_semantics=("parallel", "parallel", "arbitrary"),
            vmem_limit_bytes=_VMEM_LIMIT),
    )(x2d, w, b.reshape(1, -1))


# ---------------------------------------------------------------------------
# Kernel 3: fused linear + residual add + LayerNorm:
#   o = LayerNorm(x @ w + b + residual)  * gamma + beta
# grid=(R/tm, K/tk); the output block (tm, Nout=full LN width) is resident
# across k and acts as the f32 accumulator; the add+LN epilogue runs at
# k==last. Used for both the attention out-projection+norm1/norm2 and the
# second feed-forward matmul + norm3 (saves two kernel launches and two
# (R, d_model) HBM round trips per decoder layer).
# ---------------------------------------------------------------------------
def _linear_res_ln_kernel(x_ref, w_ref, b_ref, r_ref, g_ref, beta_ref, o_ref,
                          *, eps):
    k = pl.program_id(1)

    @pl.when(k == 0)
    def _():
        o_ref[...] = jnp.zeros_like(o_ref)

    o_ref[...] += jnp.dot(x_ref[...], w_ref[...],
                          preferred_element_type=jnp.float32)

    @pl.when(k == pl.num_programs(1) - 1)
    def _():
        y = o_ref[...] + b_ref[...] + r_ref[...]
        mu = jnp.mean(y, axis=-1, keepdims=True)
        yc = y - mu
        var = jnp.mean(yc * yc, axis=-1, keepdims=True)
        o_ref[...] = yc * lax.rsqrt(var + eps) * g_ref[...] + beta_ref[...]


def pallas_linear_res_ln(x2d, w, b, residual, gamma, beta, *, eps=1e-5):
    R, K = x2d.shape
    _, Nout = w.shape
    tm = _row_tile(R, 256)
    tk = _col_tile(K, 512)
    kernel = functools.partial(_linear_res_ln_kernel, eps=eps)
    return pl.pallas_call(
        kernel,
        out_shape=jax.ShapeDtypeStruct((R, Nout), jnp.float32),
        grid=(R // tm, K // tk),
        in_specs=[
            pl.BlockSpec((tm, tk), lambda i, k: (i, k)),
            pl.BlockSpec((tk, Nout), lambda i, k: (k, 0)),
            pl.BlockSpec((1, Nout), lambda i, k: (0, 0)),
            pl.BlockSpec((tm, Nout), lambda i, k: (i, 0)),
            pl.BlockSpec((1, Nout), lambda i, k: (0, 0)),
            pl.BlockSpec((1, Nout), lambda i, k: (0, 0)),
        ],
        out_specs=pl.BlockSpec((tm, Nout), lambda i, k: (i, 0)),
        compiler_params=pltpu.CompilerParams(
            dimension_semantics=("parallel", "arbitrary"),
            vmem_limit_bytes=_VMEM_LIMIT),
    )(x2d, w, b.reshape(1, -1), residual, gamma.reshape(1, -1),
      beta.reshape(1, -1))


# ---------------------------------------------------------------------------
# Module-level forward functions (only free contiguous reshapes in JAX glue).
# ---------------------------------------------------------------------------
def decoder_layer(x2d, N, S, M, p, *, num_heads):
    # --- self attention -> fc_out + residual + LayerNorm (fused epilogue) ---
    # TODO(synk): optional `mask` path (masked_fill) not implemented; the
    # reference masks would not broadcast against its (N,S,H,H) energy anyway.
    ctx = fused_qkv_head_attention(x2d.reshape(N, S, M), p["attn"]["w_qkv"],
                                   p["attn"]["b_qkv"], num_heads=num_heads)
    # raw (N,H,S,Dh) -> (N*S, M) flatten == the reference's reshape (no transpose).
    h = pallas_linear_res_ln(ctx.reshape(N * S, M),
                             p["attn"]["w_out"], p["attn"]["b_out"],
                             x2d, p["norm1"]["g"], p["norm1"]["b"])
    # TODO(synk): the reference call self.encoder_attention(x, enc_out, src_mask)
    # is a TypeError in PyTorch (forward signature is (x, mask)); reproduced
    # here as self-attention on x (enc_out / src_mask unused).
    ctx2 = fused_qkv_head_attention(h.reshape(N, S, M), p["enc_attn"]["w_qkv"],
                                    p["enc_attn"]["b_qkv"], num_heads=num_heads)
    h2 = pallas_linear_res_ln(ctx2.reshape(N * S, M),
                              p["enc_attn"]["w_out"], p["enc_attn"]["b_out"],
                              h, p["norm2"]["g"], p["norm2"]["b"])
    # --- FeedForward: fc2(dropout(relu(fc1(x)))) + residual + LayerNorm -----
    # (dropout is identity at inference; relu fused into the fc1 matmul,
    #  fc2 + add + norm3 fused into one kernel)
    ff1 = pallas_linear(h2, p["ff"]["w1"], p["ff"]["b1"], activation="relu")
    h3 = pallas_linear_res_ln(ff1, p["ff"]["w2"], p["ff"]["b2"],
                              h2, p["norm3"]["g"], p["norm3"]["b"])
    return h3


def decoder_forward(tokens, enc_out, params, *, num_heads, vocab_size):
    # TODO(synk): embedding row-gather + dropout left to XLA (gather is not a
    # tiled-DMA-friendly pattern; dropout is identity at inference).
    x = jnp.take(params["embedding"], tokens, axis=0)            # (N, S, M)
    N, S, M = x.shape
    x2d = x.reshape(N * S, M)
    for lp in params["layers"]:
        x2d = decoder_layer(x2d, N, S, M, lp, num_heads=num_heads)
    # Final projection runs lane-dense (vocab padded to a multiple of 128 with
    # zero weight columns), then the padding is sliced off.
    logits = pallas_linear(x2d, params["w_fc_out"], params["b_fc_out"])
    return logits[:, :vocab_size].reshape(N, S, vocab_size)


# ---------------------------------------------------------------------------
# Parameter handling: PyTorch-layout params (Linear weights stored (out, in))
# are converted ONCE to the kernel layout: pre-transposed weights, the
# 1/sqrt(head_dim) softmax scale folded into the Q projection, and the vocab
# projection zero-padded to a lane-dense multiple of 128 columns.
# ---------------------------------------------------------------------------
def prepare_params(tp, *, num_heads):
    def prep_mha(p):
        d_model = p["w_qkv"].shape[1]
        scale = 1.0 / ((d_model // num_heads) ** 0.5)
        w = p["w_qkv"].T                                     # (M, 3M)
        b = p["b_qkv"]
        w = w.at[:, :d_model].multiply(scale)
        b = b.at[:d_model].multiply(scale)
        return {"w_qkv": w, "b_qkv": b,
                "w_out": p["w_out"].T, "b_out": p["b_out"]}

    layers = []
    for lp in tp["layers"]:
        layers.append({
            "attn": prep_mha(lp["attn"]),
            "enc_attn": prep_mha(lp["enc_attn"]),
            "norm1": lp["norm1"], "norm2": lp["norm2"], "norm3": lp["norm3"],
            "ff": {"w1": lp["ff"]["w1"].T, "b1": lp["ff"]["b1"],
                   "w2": lp["ff"]["w2"].T, "b2": lp["ff"]["b2"]},
        })

    vocab, d_model = tp["w_fc_out"].shape
    vocab_pad = ((vocab + 127) // 128) * 128
    w_fc = jnp.zeros((d_model, vocab_pad), jnp.float32)
    w_fc = w_fc.at[:, :vocab].set(tp["w_fc_out"].T)
    b_fc = jnp.zeros((vocab_pad,), jnp.float32).at[:vocab].set(tp["b_fc_out"])
    return {"embedding": tp["embedding"], "layers": layers,
            "w_fc_out": w_fc, "b_fc_out": b_fc}


def init_torch_params(key, vocab, d_model, num_heads, num_layers, d_ff):
    it = iter(jax.random.split(key, 256))

    def nk():
        return next(it)

    def linear(out_f, in_f):
        w = jax.random.normal(nk(), (out_f, in_f), jnp.float32) * (in_f ** -0.5)
        b = jax.random.normal(nk(), (out_f,), jnp.float32) * 0.02
        return w, b

    def norm(d):
        return {"g": 1.0 + 0.1 * jax.random.normal(nk(), (d,), jnp.float32),
                "b": 0.05 * jax.random.normal(nk(), (d,), jnp.float32)}

    def mha(d):
        wq, bq = linear(3 * d, d)
        wo, bo = linear(d, d)
        return {"w_qkv": wq, "b_qkv": bq, "w_out": wo, "b_out": bo}

    layers = []
    for _ in range(num_layers):
        w1, b1 = linear(d_ff, d_model)
        w2, b2 = linear(d_model, d_ff)
        layers.append({"attn": mha(d_model), "enc_attn": mha(d_model),
                       "norm1": norm(d_model), "norm2": norm(d_model),
                       "norm3": norm(d_model),
                       "ff": {"w1": w1, "b1": b1, "w2": w2, "b2": b2}})
    emb = jax.random.normal(nk(), (vocab, d_model), jnp.float32)
    w_out, b_out = linear(vocab, d_model)
    return {"embedding": emb, "layers": layers,
            "w_fc_out": w_out, "b_fc_out": b_out}


# ---------------------------------------------------------------------------
# Pure-JAX reference mirroring the PyTorch math (same interpretation of the
# reference's broken encoder_attention call). Matmuls run at HIGHEST precision
# so the reference is the accurate f32 baseline.
# ---------------------------------------------------------------------------
_HI = jax.lax.Precision.HIGHEST


def _ln_ref(x, g, b, eps=1e-5):
    mu = x.mean(-1, keepdims=True)
    var = ((x - mu) ** 2).mean(-1, keepdims=True)
    return (x - mu) / jnp.sqrt(var + eps) * g + b


def _mha_ref(x, p, num_heads):
    N, S, M = x.shape
    H = num_heads
    Dh = M // H
    qkv = jnp.einsum("nsm,om->nso", x, p["w_qkv"], precision=_HI) + p["b_qkv"]
    qkv = qkv.reshape(N, S, 3, H, Dh).transpose(2, 0, 3, 1, 4)
    q, k, v = qkv[0], qkv[1], qkv[2]
    energy = jnp.einsum("nqhd,nkhd->nhqk", q, k, precision=_HI)
    att = jax.nn.softmax(energy / Dh ** 0.5, axis=3)
    out = jnp.einsum("nhql,nlhd->nqhd", att, v, precision=_HI).reshape(N, S, M)
    return jnp.einsum("nsm,om->nso", out, p["w_out"], precision=_HI) + p["b_out"]


def decoder_ref(tokens, enc_out, tp, num_heads):
    x = tp["embedding"][tokens]
    for lp in tp["layers"]:
        a = _mha_ref(x, lp["attn"], num_heads)
        x = _ln_ref(a + x, lp["norm1"]["g"], lp["norm1"]["b"])
        b = _mha_ref(x, lp["enc_attn"], num_heads)
        x = _ln_ref(b + x, lp["norm2"]["g"], lp["norm2"]["b"])
        h = jnp.maximum(
            jnp.einsum("nsm,fm->nsf", x, lp["ff"]["w1"], precision=_HI)
            + lp["ff"]["b1"], 0.0)
        f = jnp.einsum("nsf,mf->nsm", h, lp["ff"]["w2"],
                       precision=_HI) + lp["ff"]["b2"]
        x = _ln_ref(f + x, lp["norm3"]["g"], lp["norm3"]["b"])
    return jnp.einsum("nsm,vm->nsv", x, tp["w_fc_out"],
                      precision=_HI) + tp["b_fc_out"]


if __name__ == "__main__":
    vocab, d_model, num_heads, num_layers, d_ff = 50, 32, 4, 2, 64
    N, S = 2, 8

    key = jax.random.PRNGKey(0)
    kp, kt, ke = jax.random.split(key, 3)
    torch_params = init_torch_params(kp, vocab, d_model, num_heads,
                                     num_layers, d_ff)
    params = prepare_params(torch_params, num_heads=num_heads)   # once, not per step

    tokens = jax.random.randint(kt, (N, S), 0, vocab)
    enc_out = jax.random.normal(ke, (N, S, d_model), jnp.float32)  # see TODO above

    fwd = jax.jit(functools.partial(decoder_forward, num_heads=num_heads,
                                    vocab_size=vocab))
    out = jax.block_until_ready(fwd(tokens, enc_out, params))

    ref = decoder_ref(tokens, enc_out, torch_params, num_heads)
    assert out.shape == (N, S, vocab)
    # Softmax now uses an exact f32 divide (no approx reciprocal). The
    # remaining difference vs the HIGHEST-precision XLA reference comes from
    # the MXU f32 matmul pass precision at default settings; structural errors
    # would be orders of magnitude larger than this bound.
    err = float(jnp.max(jnp.abs(out - ref)))
    assert err < 2e-2, f"max abs err {err}"
    print("KERNEL_OK")
</pallas_src>

<mosaic_0001>
module attributes {stable_mosaic.version = 11 : i64} {
  func.func @_linear_kernel(%arg0: i32, %arg1: i32, %arg2: i32, %arg3: memref<16x32xf32, #tpu.memory_space<vmem>>, %arg4: memref<32x64xf32, #tpu.memory_space<vmem>>, %arg5: memref<1x64xf32, #tpu.memory_space<vmem>>, %arg6: memref<16x64xf32, #tpu.memory_space<vmem>>) attributes {dimension_semantics = [#tpu.dimension_semantics<parallel>, #tpu.dimension_semantics<parallel>, #tpu.dimension_semantics<arbitrary>], iteration_bounds = array<i64: 1, 1, 1>, scalar_prefetch = 0 : i64, scratch_operands = 0 : i64, tpu.core_type = #tpu.core_type<tc>, window_params = [{transform_indices = @transform_0, window_bounds = array<i64: 16, 32>}, {transform_indices = @transform_1, window_bounds = array<i64: 32, 64>}, {transform_indices = @transform_2, window_bounds = array<i64: 1, 64>}, {transform_indices = @transform_3, window_bounds = array<i64: 16, 64>}]} {
    %c0_i32 = arith.constant 0 : i32
    %0 = arith.cmpi eq, %arg2, %c0_i32 : i32
    %1 = arith.extui %0 : i1 to i32
    %c0_i32_0 = arith.constant 0 : i32
    %2 = arith.cmpi ne, %1, %c0_i32_0 : i32
    scf.if %2 {
      %cst_10 = arith.constant 0.000000e+00 : f32
      %12 = vector.broadcast %cst_10 : f32 to vector<16x64xf32>
      %c0_11 = arith.constant 0 : index
      %c0_12 = arith.constant 0 : index
      %13 = vector.load %arg6[%c0_11, %c0_12] : memref<16x64xf32, #tpu.memory_space<vmem>>, vector<16x64xf32>
      tpu.vector_store %arg6[%c0_11, %c0_12], %12 {strides = array<i32>} : memref<16x64xf32, #tpu.memory_space<vmem>>, vector<16x64xf32>,
    } else {
    }
    %c0 = arith.constant 0 : index
    %c0_1 = arith.constant 0 : index
    %3 = vector.load %arg6[%c0, %c0_1] : memref<16x64xf32, #tpu.memory_space<vmem>>, vector<16x64xf32>
    %c0_2 = arith.constant 0 : index
    %c0_3 = arith.constant 0 : index
    %4 = vector.load %arg3[%c0_2, %c0_3] : memref<16x32xf32, #tpu.memory_space<vmem>>, vector<16x32xf32>
    %c0_4 = arith.constant 0 : index
    %c0_5 = arith.constant 0 : index
    %5 = vector.load %arg4[%c0_4, %c0_5] : memref<32x64xf32, #tpu.memory_space<vmem>>, vector<32x64xf32>
    %cst = arith.constant dense<0.000000e+00> : vector<16x64xf32>
    %6 = tpu.matmul %4, %5, %cst {dimension_numbers = #tpu.dot_dimension_numbers<[1], [0], [0], [1], [0, 0, 1, 1], [], []>} : vector<16x32xf32>, vector<32x64xf32>, vector<16x64xf32> -> vector<16x64xf32>
    %7 = arith.addf %3, %6 : vector<16x64xf32>
    %c0_6 = arith.constant 0 : index
    %c0_7 = arith.constant 0 : index
    %8 = vector.load %arg6[%c0_6, %c0_7] : memref<16x64xf32, #tpu.memory_space<vmem>>, vector<16x64xf32>
    tpu.vector_store %arg6[%c0_6, %c0_7], %7 {strides = array<i32>} : memref<16x64xf32, #tpu.memory_space<vmem>>, vector<16x64xf32>,
    %c0_i32_8 = arith.constant 0 : i32
    %9 = arith.cmpi eq, %arg2, %c0_i32_8 : i32
    %10 = arith.extui %9 : i1 to i32
    %c0_i32_9 = arith.constant 0 : i32
    %11 = arith.cmpi ne, %10, %c0_i32_9 : i32
    scf.if %11 {
      %c0_10 = arith.constant 0 : index
      %c0_11 = arith.constant 0 : index
      %12 = vector.load %arg6[%c0_10, %c0_11] : memref<16x64xf32, #tpu.memory_space<vmem>>, vector<16x64xf32>
      %c0_12 = arith.constant 0 : index
      %c0_13 = arith.constant 0 : index
      %13 = vector.load %arg5[%c0_12, %c0_13] : memref<1x64xf32, #tpu.memory_space<vmem>>, vector<1x64xf32>
      %14 = vector.broadcast %13 : vector<1x64xf32> to vector<16x64xf32>
      %15 = arith.addf %12, %14 : vector<16x64xf32>
      %cst_14 = arith.constant 0.000000e+00 : f32
      %16 = vector.broadcast %cst_14 : f32 to vector<16x64xf32>
      %17 = arith.maximumf %15, %16 : vector<16x64xf32>
      %c0_15 = arith.constant 0 : index
      %c0_16 = arith.constant 0 : index
      %18 = vector.load %arg6[%c0_15, %c0_16] : memref<16x64xf32, #tpu.memory_space<vmem>>, vector<16x64xf32>
      tpu.vector_store %arg6[%c0_15, %c0_16], %17 {strides = array<i32>} : memref<16x64xf32, #tpu.memory_space<vmem>>, vector<16x64xf32>,
    } else {
    }
    return
  }
  func.func @transform_0(%arg0: i32, %arg1: i32, %arg2: i32) -> (i32, i32) {
    %c0_i32 = arith.constant 0 : i32
    return %arg0, %arg2 : i32, i32
  }
  func.func @transform_1(%arg0: i32, %arg1: i32, %arg2: i32) -> (i32, i32) {
    %c0_i32 = arith.constant 0 : i32
    return %arg2, %arg1 : i32, i32
  }
  func.func @transform_2(%arg0: i32, %arg1: i32, %arg2: i32) -> (i32, i32) {
    %c0_i32 = arith.constant 0 : i32
    %c0_i32_0 = arith.constant 0 : i32
    return %c0_i32, %arg1 : i32, i32
  }
  func.func @transform_3(%arg0: i32, %arg1: i32, %arg2: i32) -> (i32, i32) {
    %c0_i32 = arith.constant 0 : i32
    return %arg0, %arg1 : i32, i32
  }
}

module attributes {stable_mosaic.version = 11 : i64} {
  func.func @_linear_res_ln_kernel(%arg0: i32, %arg1: i32, %arg2: memref<16x32xf32, #tpu.memory_space<vmem>>, %arg3: memref<32x32xf32, #tpu.memory_space<vmem>>, %arg4: memref<1x32xf32, #tpu.memory_space<vmem>>, %arg5: memref<16x32xf32, #tpu.memory_space<vmem>>, %arg6: memref<1x32xf32, #tpu.memory_space<vmem>>, %arg7: memref<1x32xf32, #tpu.memory_space<vmem>>, %arg8: memref<16x32xf32, #tpu.memory_space<vmem>>) attributes {dimension_semantics = [#tpu.dimension_semantics<parallel>, #tpu.dimension_semantics<arbitrary>], iteration_bounds = array<i64: 1, 1>, scalar_prefetch = 0 : i64, scratch_operands = 0 : i64, tpu.core_type = #tpu.core_type<tc>, window_params = [{transform_indices = @transform_0, window_bounds = array<i64: 16, 32>}, {transform_indices = @transform_1, window_bounds = array<i64: 32, 32>}, {pipeline_mode = #tpu.pipeline_mode<synchronous>, transform_indices = @transform_2, window_bounds = array<i64: 1, 32>}, {transform_indices = @transform_3, window_bounds = array<i64: 16, 32>}, {pipeline_mode = #tpu.pipeline_mode<synchronous>, transform_indices = @transform_4, window_bounds = array<i64: 1, 32>}, {pipeline_mode = #tpu.pipeline_mode<synchronous>, transform_indices = @transform_5, window_bounds = array<i64: 1, 32>}, {transform_indices = @transform_6, window_bounds = array<i64: 16, 32>}]} {
    %c0_i32 = arith.constant 0 : i32
    %0 = arith.cmpi eq, %arg1, %c0_i32 : i32
    %1 = arith.extui %0 : i1 to i32
    %c0_i32_0 = arith.constant 0 : i32
    %2 = arith.cmpi ne, %1, %c0_i32_0 : i32
    scf.if %2 {
      %cst_10 = arith.constant 0.000000e+00 : f32
      %12 = vector.broadcast %cst_10 : f32 to vector<16x32xf32>
      %c0_11 = arith.constant 0 : index
      %c0_12 = arith.constant 0 : index
      %13 = vector.load %arg8[%c0_11, %c0_12] : memref<16x32xf32, #tpu.memory_space<vmem>>, vector<16x32xf32>
      tpu.vector_store %arg8[%c0_11, %c0_12], %12 {strides = array<i32>} : memref<16x32xf32, #tpu.memory_space<vmem>>, vector<16x32xf32>,
    } else {
    }
    %c0 = arith.constant 0 : index
    %c0_1 = arith.constant 0 : index
    %3 = vector.load %arg8[%c0, %c0_1] : memref<16x32xf32, #tpu.memory_space<vmem>>, vector<16x32xf32>
    %c0_2 = arith.constant 0 : index
    %c0_3 = arith.constant 0 : index
    %4 = vector.load %arg2[%c0_2, %c0_3] : memref<16x32xf32, #tpu.memory_space<vmem>>, vector<16x32xf32>
    %c0_4 = arith.constant 0 : index
    %c0_5 = arith.constant 0 : index
    %5 = vector.load %arg3[%c0_4, %c0_5] : memref<32x32xf32, #tpu.memory_space<vmem>>, vector<32x32xf32>
    %cst = arith.constant dense<0.000000e+00> : vector<16x32xf32>
    %6 = tpu.matmul %4, %5, %cst {dimension_numbers = #tpu.dot_dimension_numbers<[1], [0], [0], [1], [0, 0, 1, 1], [], []>} : vector<16x32xf32>, vector<32x32xf32>, vector<16x32xf32> -> vector<16x32xf32>
    %7 = arith.addf %3, %6 : vector<16x32xf32>
    %c0_6 = arith.constant 0 : index
    %c0_7 = arith.constant 0 : index
    %8 = vector.load %arg8[%c0_6, %c0_7] : memref<16x32xf32, #tpu.memory_space<vmem>>, vector<16x32xf32>
    tpu.vector_store %arg8[%c0_6, %c0_7], %7 {strides = array<i32>} : memref<16x32xf32, #tpu.memory_space<vmem>>, vector<16x32xf32>,
    %c0_i32_8 = arith.constant 0 : i32
    %9 = arith.cmpi eq, %arg1, %c0_i32_8 : i32
    %10 = arith.extui %9 : i1 to i32
    %c0_i32_9 = arith.constant 0 : i32
    %11 = arith.cmpi ne, %10, %c0_i32_9 : i32
    scf.if %11 {
      %c0_10 = arith.constant 0 : index
      %c0_11 = arith.constant 0 : index
      %12 = vector.load %arg8[%c0_10, %c0_11] : memref<16x32xf32, #tpu.memory_space<vmem>>, vector<16x32xf32>
      %c0_12 = arith.constant 0 : index
      %c0_13 = arith.constant 0 : index
      %13 = vector.load %arg4[%c0_12, %c0_13] : memref<1x32xf32, #tpu.memory_space<vmem>>, vector<1x32xf32>
      %14 = vector.broadcast %13 : vector<1x32xf32> to vector<16x32xf32>
      %15 = arith.addf %12, %14 : vector<16x32xf32>
      %c0_14 = arith.constant 0 : index
      %c0_15 = arith.constant 0 : index
      %16 = vector.load %arg5[%c0_14, %c0_15] : memref<16x32xf32, #tpu.memory_space<vmem>>, vector<16x32xf32>
      %17 = arith.addf %15, %16 : vector<16x32xf32>
      %cst_16 = arith.constant dense<0.000000e+00> : vector<16xf32>
      %18 = vector.multi_reduction <add>, %17, %cst_16 [1] : vector<16x32xf32> to vector<16xf32>
      %19 = vector.shape_cast %18 : vector<16xf32> to vector<16x1xf32>
      %cst_17 = arith.constant 3.200000e+01 : f32
      %20 = vector.broadcast %cst_17 : f32 to vector<16x1xf32>
      %21 = arith.divf %19, %20 : vector<16x1xf32>
      %22 = vector.broadcast %21 : vector<16x1xf32> to vector<16x32xf32>
      %23 = arith.subf %17, %22 : vector<16x32xf32>
      %24 = arith.mulf %23, %23 : vector<16x32xf32>
      %cst_18 = arith.constant dense<0.000000e+00> : vector<16xf32>
      %25 = vector.multi_reduction <add>, %24, %cst_18 [1] : vector<16x32xf32> to vector<16xf32>
      %26 = vector.shape_cast %25 : vector<16xf32> to vector<16x1xf32>
      %cst_19 = arith.constant 3.200000e+01 : f32
      %27 = vector.broadcast %cst_19 : f32 to vector<16x1xf32>
      %28 = arith.divf %26, %27 : vector<16x1xf32>
      %cst_20 = arith.constant 9.99999974E-6 : f32
      %29 = vector.broadcast %cst_20 : f32 to vector<16x1xf32>
      %30 = arith.addf %28, %29 : vector<16x1xf32>
      %31 = math.rsqrt %30 : vector<16x1xf32>
      %32 = vector.broadcast %31 : vector<16x1xf32> to vector<16x32xf32>
      %33 = arith.mulf %23, %32 : vector<16x32xf32>
      %c0_21 = arith.constant 0 : index
      %c0_22 = arith.constant 0 : index
      %34 = vector.load %arg6[%c0_21, %c0_22] : memref<1x32xf32, #tpu.memory_space<vmem>>, vector<1x32xf32>
      %35 = vector.broadcast %34 : vector<1x32xf32> to vector<16x32xf32>
      %36 = arith.mulf %33, %35 : vector<16x32xf32>
      %c0_23 = arith.constant 0 : index
      %c0_24 = arith.constant 0 : index
      %37 = vector.load %arg7[%c0_23, %c0_24] : memref<1x32xf32, #tpu.memory_space<vmem>>, vector<1x32xf32>
      %38 = vector.broadcast %37 : vector<1x32xf32> to vector<16x32xf32>
      %39 = arith.addf %36, %38 : vector<16x32xf32>
      %c0_25 = arith.constant 0 : index
      %c0_26 = arith.constant 0 : index
      %40 = vector.load %arg8[%c0_25, %c0_26] : memref<16x32xf32, #tpu.memory_space<vmem>>, vector<16x32xf32>
      tpu.vector_store %arg8[%c0_25, %c0_26], %39 {strides = array<i32>} : memref<16x32xf32, #tpu.memory_space<vmem>>, vector<16x32xf32>,
    } else {
    }
    return
  }
  func.func @transform_0(%arg0: i32, %arg1: i32) -> (i32, i32) {
    %c0_i32 = arith.constant 0 : i32
    return %arg0, %arg1 : i32, i32
  }
  func.func @transform_1(%arg0: i32, %arg1: i32) -> (i32, i32) {
    %c0_i32 = arith.constant 0 : i32
    %c0_i32_0 = arith.constant 0 : i32
    return %arg1, %c0_i32 : i32, i32
  }
  func.func @transform_2(%arg0: i32, %arg1: i32) -> (i32, i32) {
    %c0_i32 = arith.constant 0 : i32
    %c0_i32_0 = arith.constant 0 : i32
    %c0_i32_1 = arith.constant 0 : i32
    return %c0_i32, %c0_i32_0 : i32, i32
  }
  func.func @transform_3(%arg0: i32, %arg1: i32) -> (i32, i32) {
    %c0_i32 = arith.constant 0 : i32
    %c0_i32_0 = arith.constant 0 : i32
    return %arg0, %c0_i32 : i32, i32
  }
  func.func @transform_4(%arg0: i32, %arg1: i32) -> (i32, i32) {
    %c0_i32 = arith.constant 0 : i32
    %c0_i32_0 = arith.constant 0 : i32
    %c0_i32_1 = arith.constant 0 : i32
    return %c0_i32, %c0_i32_0 : i32, i32
  }
  func.func @transform_5(%arg0: i32, %arg1: i32) -> (i32, i32) {
    %c0_i32 = arith.constant 0 : i32
    %c0_i32_0 = arith.constant 0 : i32
    %c0_i32_1 = arith.constant 0 : i32
    return %c0_i32, %c0_i32_0 : i32, i32
  }
  func.func @transform_6(%arg0: i32, %arg1: i32) -> (i32, i32) {
    %c0_i32 = arith.constant 0 : i32
    %c0_i32_0 = arith.constant 0 : i32
    return %arg0, %c0_i32 : i32, i32
  }
}

module attributes {stable_mosaic.version = 11 : i64} {
  func.func @_qkv_head_attn_kernel(%arg0: i32, %arg1: i32, %arg2: memref<1x8x32xf32, #tpu.memory_space<vmem>>, %arg3: memref<32x96xf32, #tpu.memory_space<vmem>>, %arg4: memref<1x96xf32, #tpu.memory_space<vmem>>, %arg5: memref<1x4x8x8xf32, #tpu.memory_space<vmem>>) attributes {dimension_semantics = [#tpu.dimension_semantics<parallel>, #tpu.dimension_semantics<parallel>], iteration_bounds = array<i64: 2, 1>, scalar_prefetch = 0 : i64, scratch_operands = 0 : i64, tpu.core_type = #tpu.core_type<tc>, window_params = [{transform_indices = @transform_0, window_bounds = array<i64: 1, 8, 32>}, {pipeline_mode = #tpu.pipeline_mode<synchronous>, transform_indices = @transform_1, window_bounds = array<i64: 32, 96>}, {pipeline_mode = #tpu.pipeline_mode<synchronous>, transform_indices = @transform_2, window_bounds = array<i64: 1, 96>}, {transform_indices = @transform_3, window_bounds = array<i64: 1, 4, 8, 8>}]} {
    %c0 = arith.constant 0 : index
    %c0_0 = arith.constant 0 : index
    %c0_1 = arith.constant 0 : index
    %0 = vector.load %arg2[%c0, %c0_0, %c0_1] : memref<1x8x32xf32, #tpu.memory_space<vmem>>, vector<1x8x32xf32>
    %1 = vector.shape_cast %0 : vector<1x8x32xf32> to vector<8x32xf32>
    %c0_2 = arith.constant 0 : index
    %c0_3 = arith.constant 0 : index
    %2 = vector.load %arg3[%c0_2, %c0_3] : memref<32x96xf32, #tpu.memory_space<vmem>>, vector<32x96xf32>
    %cst = arith.constant dense<0.000000e+00> : vector<8x96xf32>
    %3 = tpu.matmul %1, %2, %cst {dimension_numbers = #tpu.dot_dimension_numbers<[1], [0], [0], [1], [0, 0, 1, 1], [], []>} : vector<8x32xf32>, vector<32x96xf32>, vector<8x96xf32> -> vector<8x96xf32>
    %c0_4 = arith.constant 0 : index
    %c0_5 = arith.constant 0 : index
    %4 = vector.load %arg4[%c0_4, %c0_5] : memref<1x96xf32, #tpu.memory_space<vmem>>, vector<1x96xf32>
    %5 = vector.broadcast %4 : vector<1x96xf32> to vector<8x96xf32>
    %6 = arith.addf %3, %5 : vector<8x96xf32>
    %7 = vector.extract_strided_slice %6 {offsets = [0, 0], sizes = [8, 8], strides = [1, 1]} : vector<8x96xf32> to vector<8x8xf32>
    %8 = vector.extract_strided_slice %6 {offsets = [0, 8], sizes = [8, 8], strides = [1, 1]} : vector<8x96xf32> to vector<8x8xf32>
    %9 = vector.extract_strided_slice %6 {offsets = [0, 16], sizes = [8, 8], strides = [1, 1]} : vector<8x96xf32> to vector<8x8xf32>
    %10 = vector.extract_strided_slice %6 {offsets = [0, 24], sizes = [8, 8], strides = [1, 1]} : vector<8x96xf32> to vector<8x8xf32>
    %11 = vector.shape_cast %7 : vector<8x8xf32> to vector<1x8x8xf32>
    %12 = vector.shape_cast %8 : vector<8x8xf32> to vector<1x8x8xf32>
    %13 = vector.shape_cast %9 : vector<8x8xf32> to vector<1x8x8xf32>
    %14 = vector.shape_cast %10 : vector<8x8xf32> to vector<1x8x8xf32>
    %15 = tpu.concatenate %11, %12, %13, %14 in 0 : vector<1x8x8xf32>, vector<1x8x8xf32>, vector<1x8x8xf32>, vector<1x8x8xf32> -> vector<4x8x8xf32>
    %16 = vector.extract_strided_slice %6 {offsets = [0, 32], sizes = [8, 8], strides = [1, 1]} : vector<8x96xf32> to vector<8x8xf32>
    %17 = vector.extract_strided_slice %6 {offsets = [0, 40], sizes = [8, 8], strides = [1, 1]} : vector<8x96xf32> to vector<8x8xf32>
    %18 = vector.extract_strided_slice %6 {offsets = [0, 48], sizes = [8, 8], strides = [1, 1]} : vector<8x96xf32> to vector<8x8xf32>
    %19 = vector.extract_strided_slice %6 {offsets = [0, 56], sizes = [8, 8], strides = [1, 1]} : vector<8x96xf32> to vector<8x8xf32>
    %20 = vector.extract_strided_slice %6 {offsets = [0, 64], sizes = [8, 8], strides = [1, 1]} : vector<8x96xf32> to vector<8x8xf32>
    %21 = vector.extract_strided_slice %6 {offsets = [0, 72], sizes = [8, 8], strides = [1, 1]} : vector<8x96xf32> to vector<8x8xf32>
    %22 = vector.extract_strided_slice %6 {offsets = [0, 80], sizes = [8, 8], strides = [1, 1]} : vector<8x96xf32> to vector<8x8xf32>
    %23 = vector.extract_strided_slice %6 {offsets = [0, 88], sizes = [8, 8], strides = [1, 1]} : vector<8x96xf32> to vector<8x8xf32>
    %24 = vector.shape_cast %16 : vector<8x8xf32> to vector<1x8x8xf32>
    %25 = vector.broadcast %24 : vector<1x8x8xf32> to vector<4x8x8xf32>
    %26 = arith.mulf %15, %25 : vector<4x8x8xf32>
    %cst_6 = arith.constant dense<0.000000e+00> : vector<4x8xf32>
    %27 = vector.multi_reduction <add>, %26, %cst_6 [2] : vector<4x8x8xf32> to vector<4x8xf32>
    %28 = vector.shape_cast %27 : vector<4x8xf32> to vector<4x8x1xf32>
    %29 = vector.shape_cast %17 : vector<8x8xf32> to vector<1x8x8xf32>
    %30 = vector.broadcast %29 : vector<1x8x8xf32> to vector<4x8x8xf32>
    %31 = arith.mulf %15, %30 : vector<4x8x8xf32>
    %cst_7 = arith.constant dense<0.000000e+00> : vector<4x8xf32>
    %32 = vector.multi_reduction <add>, %31, %cst_7 [2] : vector<4x8x8xf32> to vector<4x8xf32>
    %33 = vector.shape_cast %32 : vector<4x8xf32> to vector<4x8x1xf32>
    %34 = vector.shape_cast %18 : vector<8x8xf32> to vector<1x8x8xf32>
    %35 = vector.broadcast %34 : vector<1x8x8xf32> to vector<4x8x8xf32>
    %36 = arith.mulf %15, %35 : vector<4x8x8xf32>
    %cst_8 = arith.constant dense<0.000000e+00> : vector<4x8xf32>
    %37 = vector.multi_reduction <add>, %36, %cst_8 [2] : vector<4x8x8xf32> to vector<4x8xf32>
    %38 = vector.shape_cast %37 : vector<4x8xf32> to vector<4x8x1xf32>
    %39 = vector.shape_cast %19 : vector<8x8xf32> to vector<1x8x8xf32>
    %40 = vector.broadcast %39 : vector<1x8x8xf32> to vector<4x8x8xf32>
    %41 = arith.mulf %15, %40 : vector<4x8x8xf32>
    %cst_9 = arith.constant dense<0.000000e+00> : vector<4x8xf32>
    %42 = vector.multi_reduction <add>, %41, %cst_9 [2] : vector<4x8x8xf32> to vector<4x8xf32>
    %43 = vector.shape_cast %42 : vector<4x8xf32> to vector<4x8x1xf32>
    %44 = arith.maximumf %28, %33 : vector<4x8x1xf32>
    %45 = arith.maximumf %44, %38 : vector<4x8x1xf32>
    %46 = arith.maximumf %45, %43 : vector<4x8x1xf32>
    %47 = arith.subf %28, %46 : vector<4x8x1xf32>
    %48 = math.exp %47 : vector<4x8x1xf32>
    %49 = arith.subf %33, %46 : vector<4x8x1xf32>
    %50 = math.exp %49 : vector<4x8x1xf32>
    %51 = arith.subf %38, %46 : vector<4x8x1xf32>
    %52 = math.exp %51 : vector<4x8x1xf32>
    %53 = arith.subf %43, %46 : vector<4x8x1xf32>
    %54 = math.exp %53 : vector<4x8x1xf32>
    %55 = arith.addf %48, %50 : vector<4x8x1xf32>
    %56 = arith.addf %55, %52 : vector<4x8x1xf32>
    %57 = arith.addf %56, %54 : vector<4x8x1xf32>
    %cst_10 = arith.constant 1.000000e+00 : f32
    %58 = vector.broadcast %cst_10 : f32 to vector<4x8x1xf32>
    %59 = arith.divf %58, %57 : vector<4x8x1xf32>
    %60 = arith.mulf %48, %59 : vector<4x8x1xf32>
    %61 = vector.shape_cast %20 : vector<8x8xf32> to vector<1x8x8xf32>
    %62 = vector.broadcast %60 : vector<4x8x1xf32> to vector<4x8x8xf32>
    %63 = vector.broadcast %61 : vector<1x8x8xf32> to vector<4x8x8xf32>
    %64 = arith.mulf %62, %63 : vector<4x8x8xf32>
    %65 = arith.mulf %50, %59 : vector<4x8x1xf32>
    %66 = vector.shape_cast %21 : vector<8x8xf32> to vector<1x8x8xf32>
    %67 = vector.broadcast %65 : vector<4x8x1xf32> to vector<4x8x8xf32>
    %68 = vector.broadcast %66 : vector<1x8x8xf32> to vector<4x8x8xf32>
    %69 = arith.mulf %67, %68 : vector<4x8x8xf32>
    %70 = arith.mulf %52, %59 : vector<4x8x1xf32>
    %71 = vector.shape_cast %22 : vector<8x8xf32> to vector<1x8x8xf32>
    %72 = vector.broadcast %70 : vector<4x8x1xf32> to vector<4x8x8xf32>
    %73 = vector.broadcast %71 : vector<1x8x8xf32> to vector<4x8x8xf32>
    %74 = arith.mulf %72, %73 : vector<4x8x8xf32>
    %75 = arith.mulf %54, %59 : vector<4x8x1xf32>
    %76 = vector.shape_cast %23 : vector<8x8xf32> to vector<1x8x8xf32>
    %77 = vector.broadcast %75 : vector<4x8x1xf32> to vector<4x8x8xf32>
    %78 = vector.broadcast %76 : vector<1x8x8xf32> to vector<4x8x8xf32>
    %79 = arith.mulf %77, %78 : vector<4x8x8xf32>
    %80 = arith.addf %64, %69 : vector<4x8x8xf32>
    %81 = arith.addf %80, %74 : vector<4x8x8xf32>
    %82 = arith.addf %81, %79 : vector<4x8x8xf32>
    %c0_11 = arith.constant 0 : index
    %c0_12 = arith.constant 0 : index
    %c0_13 = arith.constant 0 : index
    %c0_14 = arith.constant 0 : index
    %83 = vector.load %arg5[%c0_11, %c0_12, %c0_13, %c0_14] : memref<1x4x8x8xf32, #tpu.memory_space<vmem>>, vector<1x4x8x8xf32>
    %84 = vector.shape_cast %83 : vector<1x4x8x8xf32> to vector<4x8x8xf32>
    %85 = vector.shape_cast %82 : vector<4x8x8xf32> to vector<1x4x8x8xf32>
    tpu.vector_store %arg5[%c0_11, %c0_12, %c0_13, %c0_14], %85 {strides = array<i32>} : memref<1x4x8x8xf32, #tpu.memory_space<vmem>>, vector<1x4x8x8xf32>,
    return
  }
  func.func @transform_0(%arg0: i32, %arg1: i32) -> (i32, i32, i32) {
    %c0_i32 = arith.constant 0 : i32
    %c0_i32_0 = arith.constant 0 : i32
    return %arg0, %arg1, %c0_i32 : i32, i32, i32
  }
  func.func @transform_1(%arg0: i32, %arg1: i32) -> (i32, i32) {
    %c0_i32 = arith.constant 0 : i32
    %c0_i32_0 = arith.constant 0 : i32
    %c0_i32_1 = arith.constant 0 : i32
    return %c0_i32, %c0_i32_0 : i32, i32
  }
  func.func @transform_2(%arg0: i32, %arg1: i32) -> (i32, i32) {
    %c0_i32 = arith.constant 0 : i32
    %c0_i32_0 = arith.constant 0 : i32
    %c0_i32_1 = arith.constant 0 : i32
    return %c0_i32, %c0_i32_0 : i32, i32
  }
  func.func @transform_3(%arg0: i32, %arg1: i32) -> (i32, i32, i32, i32) {
    %c0_i32 = arith.constant 0 : i32
    %c0_i32_0 = arith.constant 0 : i32
    %c0_i32_1 = arith.constant 0 : i32
    return %arg0, %c0_i32, %arg1, %c0_i32_0 : i32, i32, i32, i32
  }
}

module attributes {stable_mosaic.version = 11 : i64} {
  func.func @_linear_res_ln_kernel(%arg0: i32, %arg1: i32, %arg2: memref<16x64xf32, #tpu.memory_space<vmem>>, %arg3: memref<64x32xf32, #tpu.memory_space<vmem>>, %arg4: memref<1x32xf32, #tpu.memory_space<vmem>>, %arg5: memref<16x32xf32, #tpu.memory_space<vmem>>, %arg6: memref<1x32xf32, #tpu.memory_space<vmem>>, %arg7: memref<1x32xf32, #tpu.memory_space<vmem>>, %arg8: memref<16x32xf32, #tpu.memory_space<vmem>>) attributes {dimension_semantics = [#tpu.dimension_semantics<parallel>, #tpu.dimension_semantics<arbitrary>], iteration_bounds = array<i64: 1, 1>, scalar_prefetch = 0 : i64, scratch_operands = 0 : i64, tpu.core_type = #tpu.core_type<tc>, window_params = [{transform_indices = @transform_0, window_bounds = array<i64: 16, 64>}, {transform_indices = @transform_1, window_bounds = array<i64: 64, 32>}, {pipeline_mode = #tpu.pipeline_mode<synchronous>, transform_indices = @transform_2, window_bounds = array<i64: 1, 32>}, {transform_indices = @transform_3, window_bounds = array<i64: 16, 32>}, {pipeline_mode = #tpu.pipeline_mode<synchronous>, transform_indices = @transform_4, window_bounds = array<i64: 1, 32>}, {pipeline_mode = #tpu.pipeline_mode<synchronous>, transform_indices = @transform_5, window_bounds = array<i64: 1, 32>}, {transform_indices = @transform_6, window_bounds = array<i64: 16, 32>}]} {
    %c0_i32 = arith.constant 0 : i32
    %0 = arith.cmpi eq, %arg1, %c0_i32 : i32
    %1 = arith.extui %0 : i1 to i32
    %c0_i32_0 = arith.constant 0 : i32
    %2 = arith.cmpi ne, %1, %c0_i32_0 : i32
    scf.if %2 {
      %cst_10 = arith.constant 0.000000e+00 : f32
      %12 = vector.broadcast %cst_10 : f32 to vector<16x32xf32>
      %c0_11 = arith.constant 0 : index
      %c0_12 = arith.constant 0 : index
      %13 = vector.load %arg8[%c0_11, %c0_12] : memref<16x32xf32, #tpu.memory_space<vmem>>, vector<16x32xf32>
      tpu.vector_store %arg8[%c0_11, %c0_12], %12 {strides = array<i32>} : memref<16x32xf32, #tpu.memory_space<vmem>>, vector<16x32xf32>,
    } else {
    }
    %c0 = arith.constant 0 : index
    %c0_1 = arith.constant 0 : index
    %3 = vector.load %arg8[%c0, %c0_1] : memref<16x32xf32, #tpu.memory_space<vmem>>, vector<16x32xf32>
    %c0_2 = arith.constant 0 : index
    %c0_3 = arith.constant 0 : index
    %4 = vector.load %arg2[%c0_2, %c0_3] : memref<16x64xf32, #tpu.memory_space<vmem>>, vector<16x64xf32>
    %c0_4 = arith.constant 0 : index
    %c0_5 = arith.constant 0 : index
    %5 = vector.load %arg3[%c0_4, %c0_5] : memref<64x32xf32, #tpu.memory_space<vmem>>, vector<64x32xf32>
    %cst = arith.constant dense<0.000000e+00> : vector<16x32xf32>
    %6 = tpu.matmul %4, %5, %cst {dimension_numbers = #tpu.dot_dimension_numbers<[1], [0], [0], [1], [0, 0, 1, 1], [], []>} : vector<16x64xf32>, vector<64x32xf32>, vector<16x32xf32> -> vector<16x32xf32>
    %7 = arith.addf %3, %6 : vector<16x32xf32>
    %c0_6 = arith.constant 0 : index
    %c0_7 = arith.constant 0 : index
    %8 = vector.load %arg8[%c0_6, %c0_7] : memref<16x32xf32, #tpu.memory_space<vmem>>, vector<16x32xf32>
    tpu.vector_store %arg8[%c0_6, %c0_7], %7 {strides = array<i32>} : memref<16x32xf32, #tpu.memory_space<vmem>>, vector<16x32xf32>,
    %c0_i32_8 = arith.constant 0 : i32
    %9 = arith.cmpi eq, %arg1, %c0_i32_8 : i32
    %10 = arith.extui %9 : i1 to i32
    %c0_i32_9 = arith.constant 0 : i32
    %11 = arith.cmpi ne, %10, %c0_i32_9 : i32
    scf.if %11 {
      %c0_10 = arith.constant 0 : index
      %c0_11 = arith.constant 0 : index
      %12 = vector.load %arg8[%c0_10, %c0_11] : memref<16x32xf32, #tpu.memory_space<vmem>>, vector<16x32xf32>
      %c0_12 = arith.constant 0 : index
      %c0_13 = arith.constant 0 : index
      %13 = vector.load %arg4[%c0_12, %c0_13] : memref<1x32xf32, #tpu.memory_space<vmem>>, vector<1x32xf32>
      %14 = vector.broadcast %13 : vector<1x32xf32> to vector<16x32xf32>
      %15 = arith.addf %12, %14 : vector<16x32xf32>
      %c0_14 = arith.constant 0 : index
      %c0_15 = arith.constant 0 : index
      %16 = vector.load %arg5[%c0_14, %c0_15] : memref<16x32xf32, #tpu.memory_space<vmem>>, vector<16x32xf32>
      %17 = arith.addf %15, %16 : vector<16x32xf32>
      %cst_16 = arith.constant dense<0.000000e+00> : vector<16xf32>
      %18 = vector.multi_reduction <add>, %17, %cst_16 [1] : vector<16x32xf32> to vector<16xf32>
      %19 = vector.shape_cast %18 : vector<16xf32> to vector<16x1xf32>
      %cst_17 = arith.constant 3.200000e+01 : f32
      %20 = vector.broadcast %cst_17 : f32 to vector<16x1xf32>
      %21 = arith.divf %19, %20 : vector<16x1xf32>
      %22 = vector.broadcast %21 : vector<16x1xf32> to vector<16x32xf32>
      %23 = arith.subf %17, %22 : vector<16x32xf32>
      %24 = arith.mulf %23, %23 : vector<16x32xf32>
      %cst_18 = arith.constant dense<0.000000e+00> : vector<16xf32>
      %25 = vector.multi_reduction <add>, %24, %cst_18 [1] : vector<16x32xf32> to vector<16xf32>
      %26 = vector.shape_cast %25 : vector<16xf32> to vector<16x1xf32>
      %cst_19 = arith.constant 3.200000e+01 : f32
      %27 = vector.broadcast %cst_19 : f32 to vector<16x1xf32>
      %28 = arith.divf %26, %27 : vector<16x1xf32>
      %cst_20 = arith.constant 9.99999974E-6 : f32
      %29 = vector.broadcast %cst_20 : f32 to vector<16x1xf32>
      %30 = arith.addf %28, %29 : vector<16x1xf32>
      %31 = math.rsqrt %30 : vector<16x1xf32>
      %32 = vector.broadcast %31 : vector<16x1xf32> to vector<16x32xf32>
      %33 = arith.mulf %23, %32 : vector<16x32xf32>
      %c0_21 = arith.constant 0 : index
      %c0_22 = arith.constant 0 : index
      %34 = vector.load %arg6[%c0_21, %c0_22] : memref<1x32xf32, #tpu.memory_space<vmem>>, vector<1x32xf32>
      %35 = vector.broadcast %34 : vector<1x32xf32> to vector<16x32xf32>
      %36 = arith.mulf %33, %35 : vector<16x32xf32>
      %c0_23 = arith.constant 0 : index
      %c0_24 = arith.constant 0 : index
      %37 = vector.load %arg7[%c0_23, %c0_24] : memref<1x32xf32, #tpu.memory_space<vmem>>, vector<1x32xf32>
      %38 = vector.broadcast %37 : vector<1x32xf32> to vector<16x32xf32>
      %39 = arith.addf %36, %38 : vector<16x32xf32>
      %c0_25 = arith.constant 0 : index
      %c0_26 = arith.constant 0 : index
      %40 = vector.load %arg8[%c0_25, %c0_26] : memref<16x32xf32, #tpu.memory_space<vmem>>, vector<16x32xf32>
      tpu.vector_store %arg8[%c0_25, %c0_26], %39 {strides = array<i32>} : memref<16x32xf32, #tpu.memory_space<vmem>>, vector<16x32xf32>,
    } else {
    }
    return
  }
  func.func @transform_0(%arg0: i32, %arg1: i32) -> (i32, i32) {
    %c0_i32 = arith.constant 0 : i32
    return %arg0, %arg1 : i32, i32
  }
  func.func @transform_1(%arg0: i32, %arg1: i32) -> (i32, i32) {
    %c0_i32 = arith.constant 0 : i32
    %c0_i32_0 = arith.constant 0 : i32
    return %arg1, %c0_i32 : i32, i32
  }
  func.func @transform_2(%arg0: i32, %arg1: i32) -> (i32, i32) {
    %c0_i32 = arith.constant 0 : i32
    %c0_i32_0 = arith.constant 0 : i32
    %c0_i32_1 = arith.constant 0 : i32
    return %c0_i32, %c0_i32_0 : i32, i32
  }
  func.func @transform_3(%arg0: i32, %arg1: i32) -> (i32, i32) {
    %c0_i32 = arith.constant 0 : i32
    %c0_i32_0 = arith.constant 0 : i32
    return %arg0, %c0_i32 : i32, i32
  }
  func.func @transform_4(%arg0: i32, %arg1: i32) -> (i32, i32) {
    %c0_i32 = arith.constant 0 : i32
    %c0_i32_0 = arith.constant 0 : i32
    %c0_i32_1 = arith.constant 0 : i32
    return %c0_i32, %c0_i32_0 : i32, i32
  }
  func.func @transform_5(%arg0: i32, %arg1: i32) -> (i32, i32) {
    %c0_i32 = arith.constant 0 : i32
    %c0_i32_0 = arith.constant 0 : i32
    %c0_i32_1 = arith.constant 0 : i32
    return %c0_i32, %c0_i32_0 : i32, i32
  }
  func.func @transform_6(%arg0: i32, %arg1: i32) -> (i32, i32) {
    %c0_i32 = arith.constant 0 : i32
    %c0_i32_0 = arith.constant 0 : i32
    return %arg0, %c0_i32 : i32, i32
  }
}

module attributes {stable_mosaic.version = 11 : i64} {
  func.func @_linear_kernel(%arg0: i32, %arg1: i32, %arg2: i32, %arg3: memref<16x32xf32, #tpu.memory_space<vmem>>, %arg4: memref<32x128xf32, #tpu.memory_space<vmem>>, %arg5: memref<1x128xf32, #tpu.memory_space<vmem>>, %arg6: memref<16x128xf32, #tpu.memory_space<vmem>>) attributes {dimension_semantics = [#tpu.dimension_semantics<parallel>, #tpu.dimension_semantics<parallel>, #tpu.dimension_semantics<arbitrary>], iteration_bounds = array<i64: 1, 1, 1>, scalar_prefetch = 0 : i64, scratch_operands = 0 : i64, tpu.core_type = #tpu.core_type<tc>, window_params = [{transform_indices = @transform_0, window_bounds = array<i64: 16, 32>}, {transform_indices = @transform_1, window_bounds = array<i64: 32, 128>}, {transform_indices = @transform_2, window_bounds = array<i64: 1, 128>}, {transform_indices = @transform_3, window_bounds = array<i64: 16, 128>}]} {
    %c0_i32 = arith.constant 0 : i32
    %0 = arith.cmpi eq, %arg2, %c0_i32 : i32
    %1 = arith.extui %0 : i1 to i32
    %c0_i32_0 = arith.constant 0 : i32
    %2 = arith.cmpi ne, %1, %c0_i32_0 : i32
    scf.if %2 {
      %cst_10 = arith.constant 0.000000e+00 : f32
      %12 = vector.broadcast %cst_10 : f32 to vector<16x128xf32>
      %c0_11 = arith.constant 0 : index
      %c0_12 = arith.constant 0 : index
      %13 = vector.load %arg6[%c0_11, %c0_12] : memref<16x128xf32, #tpu.memory_space<vmem>>, vector<16x128xf32>
      tpu.vector_store %arg6[%c0_11, %c0_12], %12 {strides = array<i32>} : memref<16x128xf32, #tpu.memory_space<vmem>>, vector<16x128xf32>,
    } else {
    }
    %c0 = arith.constant 0 : index
    %c0_1 = arith.constant 0 : index
    %3 = vector.load %arg6[%c0, %c0_1] : memref<16x128xf32, #tpu.memory_space<vmem>>, vector<16x128xf32>
    %c0_2 = arith.constant 0 : index
    %c0_3 = arith.constant 0 : index
    %4 = vector.load %arg3[%c0_2, %c0_3] : memref<16x32xf32, #tpu.memory_space<vmem>>, vector<16x32xf32>
    %c0_4 = arith.constant 0 : index
    %c0_5 = arith.constant 0 : index
    %5 = vector.load %arg4[%c0_4, %c0_5] : memref<32x128xf32, #tpu.memory_space<vmem>>, vector<32x128xf32>
    %cst = arith.constant dense<0.000000e+00> : vector<16x128xf32>
    %6 = tpu.matmul %4, %5, %cst {dimension_numbers = #tpu.dot_dimension_numbers<[1], [0], [0], [1], [0, 0, 1, 1], [], []>} : vector<16x32xf32>, vector<32x128xf32>, vector<16x128xf32> -> vector<16x128xf32>
    %7 = arith.addf %3, %6 : vector<16x128xf32>
    %c0_6 = arith.constant 0 : index
    %c0_7 = arith.constant 0 : index
    %8 = vector.load %arg6[%c0_6, %c0_7] : memref<16x128xf32, #tpu.memory_space<vmem>>, vector<16x128xf32>
    tpu.vector_store %arg6[%c0_6, %c0_7], %7 {strides = array<i32>} : memref<16x128xf32, #tpu.memory_space<vmem>>, vector<16x128xf32>,
    %c0_i32_8 = arith.constant 0 : i32
    %9 = arith.cmpi eq, %arg2, %c0_i32_8 : i32
    %10 = arith.extui %9 : i1 to i32
    %c0_i32_9 = arith.constant 0 : i32
    %11 = arith.cmpi ne, %10, %c0_i32_9 : i32
    scf.if %11 {
      %c0_10 = arith.constant 0 : index
      %c0_11 = arith.constant 0 : index
      %12 = vector.load %arg6[%c0_10, %c0_11] : memref<16x128xf32, #tpu.memory_space<vmem>>, vector<16x128xf32>
      %c0_12 = arith.constant 0 : index
      %c0_13 = arith.constant 0 : index
      %13 = vector.load %arg5[%c0_12, %c0_13] : memref<1x128xf32, #tpu.memory_space<vmem>>, vector<1x128xf32>
      %14 = vector.broadcast %13 : vector<1x128xf32> to vector<16x128xf32>
      %15 = arith.addf %12, %14 : vector<16x128xf32>
      %c0_14 = arith.constant 0 : index
      %c0_15 = arith.constant 0 : index
      %16 = vector.load %arg6[%c0_14, %c0_15] : memref<16x128xf32, #tpu.memory_space<vmem>>, vector<16x128xf32>
      tpu.vector_store %arg6[%c0_14, %c0_15], %15 {strides = array<i32>} : memref<16x128xf32, #tpu.memory_space<vmem>>, vector<16x128xf32>,
    } else {
    }
    return
  }
  func.func @transform_0(%arg0: i32, %arg1: i32, %arg2: i32) -> (i32, i32) {
    %c0_i32 = arith.constant 0 : i32
    return %arg0, %arg2 : i32, i32
  }
  func.func @transform_1(%arg0: i32, %arg1: i32, %arg2: i32) -> (i32, i32) {
    %c0_i32 = arith.constant 0 : i32
    return %arg2, %arg1 : i32, i32
  }
  func.func @transform_2(%arg0: i32, %arg1: i32, %arg2: i32) -> (i32, i32) {
    %c0_i32 = arith.constant 0 : i32
    %c0_i32_0 = arith.constant 0 : i32
    return %c0_i32, %arg1 : i32, i32
  }
  func.func @transform_3(%arg0: i32, %arg1: i32, %arg2: i32) -> (i32, i32) {
    %c0_i32 = arith.constant 0 : i32
    return %arg0, %arg1 : i32, i32
  }
}

</mosaic_0001>

<bundles_post_ra>
// kernel: decoder_forward.18
= control target key start
LH: loop header
LB: loop body
LE: loop exit
PB: predicated region body
PF: predicated region fallthrough
CT: control target
= control target key end

     0   :  { %11 = vsyncpa [#allocation3], 0  ;;  %s679_s0 = inlined_call_operand.hbm [shape: f32[16,64], index: 0, kind: input, shape index: {}]   ;;  %s680_s1 = inlined_call_operand.hbm [shape: f32[64,32], index: 1, kind: input, shape index: {}]   ;;  %s681_s2 = inlined_call_operand.hbm [shape: f32[1,32], index: 2, kind: input, shape index: {}]   ;;  %s682_s3 = inlined_call_operand.hbm [shape: f32[16,32], index: 3, kind: input, shape index: {}]   ;;  %s683_s4 = inlined_call_operand.hbm [shape: f32[1,32], index: 4, kind: input, shape index: {}]   ;;  %s684_s5 = inlined_call_operand.hbm [shape: f32[1,32], index: 5, kind: input, shape index: {}]   ;;  %s685_s6 = inlined_call_operand.hbm [shape: f32[16,32], index: 6, kind: output, shape index: {}]  }
   0x1   :  { %12 = vsyncpa [#allocation6], 0 }
   0x2   :  { %13 = vsyncpa [#allocation9], 0 }
   0x3   :  { %14 = vsyncpa [#allocation12], 0 }
   0x4   :  { %15 = vsyncpa [#allocation4], 0  ;;  %s519_s21 = smov [#allocation5]   ;;  %s520_s23 = smov [#allocation8]  }
   0x5   :  { %s33_s22 = sshll.u32 %s519_s21, 4  ;;  %s55_s24 = sshll.u32 %s520_s23, 4  ;;  %s34_s22 = int_to_ptr.vmem [resolvable:$true] %s33_s22  ;;  %s564_s24 = int_to_ptr.vmem [resolvable:$true] %s55_s24 }
   0x6   :  { %s355_s27 = scalar_lea.hbm %s680_s1, 1024 }
   0x7   :  { %p356_p0 = scmp.ne.s32.totalorder %s680_s1, %s355_s27  ;;  %p359_p1 = scmp.lt.u32.totalorder %s355_s27, %s680_s1 }
   0x9   :  { %p361_p2 = pnand %p359_p1, %p356_p0 }
   0xb   :  { %364 = shalt.err (!%p361_p2)
}
   0xc   :  { %s365_s8 = scalar_lea.vmem %s34_s22, 1024  ;;  %p370_p4 = scmp.lt.s32.totalorder %s34_s22, %s34_s22 }
   0xd   :  { %p366_p3 = scmp.ne.s32.totalorder %s34_s22, %s365_s8  ;;  %p371_p5 = scmp.lt.s32.totalorder %s365_s8, %s365_s8 }
   0xf   :  { %p372_p6 = por %p371_p5, %p370_p4 }
  0x11   :  { %p373_p7 = pnand %p372_p6, %p366_p3 }
  0x13   :  { %376 = shalt.err (!%p373_p7)
}
  0x14   :  { %s521_s9 = smov 128   ;;  %s522_s10 = smov 8  }
  0x15   :  { %39 = dma.hbm_to_vmem [thread:$0]  %s680_s1, 1024, %s34_s22, [#allocation6], %s521_s9, %s521_s9, %s522_s10  }
  0x16   :  { %s377_s15 = scalar_lea.hbm %s682_s3, 256 }
  0x17   :  { %p378_p8 = scmp.ne.s32.totalorder %s682_s3, %s377_s15  ;;  %p381_p9 = scmp.lt.u32.totalorder %s377_s15, %s682_s3 }
  0x19   :  { %p383_p10 = pnand %p381_p9, %p378_p8 }
  0x1b   :  { %386 = shalt.err (!%p383_p10)
}
  0x1c   :  { %s387_s20 = scalar_lea.vmem %s564_s24, 256  ;;  %p392_p12 = scmp.lt.s32.totalorder %s564_s24, %s564_s24 }
  0x1d   :  { %p388_p11 = scmp.ne.s32.totalorder %s564_s24, %s387_s20  ;;  %p393_p13 = scmp.lt.s32.totalorder %s387_s20, %s387_s20 }
  0x1f   :  { %p394_p0 = por %p393_p13, %p392_p12 }
  0x21   :  { %p395_p1 = pnand %p394_p0, %p388_p11 }
  0x23   :  { %398 = shalt.err (!%p395_p1)
}
  0x24   :  { %61 = dma.hbm_to_vmem [thread:$0]  %s682_s3, 256, %s564_s24, [#allocation9], %s521_s9, %s521_s9, %s522_s10  }
  0x25   :  { %s523_s22 = smov [#allocation2]   ;;  %s524_s25 = smov [#allocation7]  }
  0x26   :  { %s21_s23 = sshll.u32 %s523_s22, 4  ;;  %s46_s26 = sshll.u32 %s524_s25, 4  ;;  %s22_s23 = int_to_ptr.vmem [resolvable:$true] %s21_s23  ;;  %s47_s26 = int_to_ptr.vmem [resolvable:$true] %s46_s26 }
  0x27   :  { %s399_s29 = scalar_lea.hbm %s679_s0, 256 }
  0x28   :  { %p400_p2 = scmp.ne.s32.totalorder %s679_s0, %s399_s29  ;;  %p403_p3 = scmp.lt.u32.totalorder %s399_s29, %s679_s0 }
  0x2a   :  { %p405_p4 = pnand %p403_p3, %p400_p2 }
  0x2c   :  { %408 = shalt.err (!%p405_p4)
}
  0x2d   :  { %s409_s3 = scalar_lea.vmem %s22_s23, 256  ;;  %p414_p6 = scmp.lt.s32.totalorder %s22_s23, %s22_s23 }
  0x2e   :  { %p410_p5 = scmp.ne.s32.totalorder %s22_s23, %s409_s3  ;;  %p415_p7 = scmp.lt.s32.totalorder %s409_s3, %s409_s3 }
  0x30   :  { %p416_p8 = por %p415_p7, %p414_p6 }
  0x32   :  { %p417_p9 = pnand %p416_p8, %p410_p5 }
  0x34   :  { %420 = shalt.err (!%p417_p9)
}
  0x35   :  { %27 = dma.hbm_to_vmem [thread:$0]  %s679_s0, 256, %s22_s23, [#allocation3], %s521_s9, %s521_s9, %s522_s10  }
  0x36   :  { %s421_s15 = scalar_lea.hbm %s681_s2, 16 }
  0x37   :  { %p422_p10 = scmp.ne.s32.totalorder %s681_s2, %s421_s15  ;;  %p425_p11 = scmp.lt.u32.totalorder %s421_s15, %s681_s2 }
  0x39   :  { %p427_p12 = pnand %p425_p11, %p422_p10 }
  0x3b   :  { %430 = shalt.err (!%p427_p12)
}
  0x3c   :  { %s431_s20 = scalar_lea.vmem %s47_s26, 16  ;;  %s435_s1 = scalar_lea.vmem %s47_s26, 32 }
  0x3d   :  { %p432_p13 = scmp.ne.s32.totalorder %s47_s26, %s431_s20  ;;  %p436_p0 = scmp.lt.s32.totalorder %s47_s26, %s47_s26 }
  0x3e   :  { %p437_p1 = scmp.lt.s32.totalorder %s435_s1, %s431_s20 }
  0x40   :  { %p438_p2 = por %p437_p1, %p436_p0 }
  0x42   :  { %p439_p3 = pnand %p438_p2, %p432_p13 }
  0x44   :  { %442 = shalt.err (!%p439_p3)
}
  0x45   :  { %49 = dma.hbm_to_vmem [thread:$0]  %s681_s2, 16, %s47_s26, [#allocation6]  }
  0x46   :  { %s525_s22 = smov [#allocation10]   ;;  %s526_s25 = smov [#allocation11]  }
  0x47   :  { %s68_s23 = sshll.u32 %s525_s22, 4  ;;  %s78_s27 = sshll.u32 %s526_s25, 4  ;;  %s69_s23 = int_to_ptr.vmem [resolvable:$true] %s68_s23  ;;  %s79_s27 = int_to_ptr.vmem [resolvable:$true] %s78_s27 }
  0x48   :  { %s443_s30 = scalar_lea.hbm %s683_s4, 16 }
  0x49   :  { %p444_p4 = scmp.ne.s32.totalorder %s683_s4, %s443_s30  ;;  %p447_p5 = scmp.lt.u32.totalorder %s443_s30, %s683_s4 }
  0x4b   :  { %p449_p6 = pnand %p447_p5, %p444_p4 }
  0x4d   :  { %452 = shalt.err (!%p449_p6)
}
  0x4e   :  { %s453_s2 = scalar_lea.vmem %s69_s23, 16  ;;  %s457_s26 = scalar_lea.vmem %s69_s23, 32 }
  0x4f   :  { %p454_p7 = scmp.ne.s32.totalorder %s69_s23, %s453_s2  ;;  %p458_p8 = scmp.lt.s32.totalorder %s69_s23, %s69_s23 }
  0x50   :  { %p459_p9 = scmp.lt.s32.totalorder %s457_s26, %s453_s2 }
  0x52   :  { %p460_p10 = por %p459_p9, %p458_p8 }
  0x54   :  { %p461_p11 = pnand %p460_p10, %p454_p7 }
  0x56   :  { %464 = shalt.err (!%p461_p11)
}
  0x57   :  { %71 = dma.hbm_to_vmem [thread:$0]  %s683_s4, 16, %s69_s23, [#allocation9]  }
  0x58   :  { %s465_s15 = scalar_lea.hbm %s684_s5, 16 }
  0x59   :  { %p466_p12 = scmp.ne.s32.totalorder %s684_s5, %s465_s15  ;;  %p469_p13 = scmp.lt.u32.totalorder %s465_s15, %s684_s5 }
  0x5b   :  { %p471_p0 = pnand %p469_p13, %p466_p12 }
  0x5d   :  { %474 = shalt.err (!%p471_p0)
}
  0x5e   :  { %s475_s20 = scalar_lea.vmem %s79_s27, 16  ;;  %s479_s1 = scalar_lea.vmem %s79_s27, 32 }
  0x5f   :  { %p476_p1 = scmp.ne.s32.totalorder %s79_s27, %s475_s20  ;;  %p480_p2 = scmp.lt.s32.totalorder %s79_s27, %s79_s27 }
  0x60   :  { %p481_p3 = scmp.lt.s32.totalorder %s479_s1, %s475_s20 }
  0x62   :  { %p482_p4 = por %p481_p3, %p480_p2 }
  0x64   :  { %p483_p5 = pnand %p482_p4, %p476_p1 }
  0x66   :  { %486 = shalt.err (!%p483_p5)
}
  0x67   :  { %81 = dma.hbm_to_vmem [thread:$0]  %s684_s5, 16, %s79_s27, [#allocation12]  }
  0x68   :  { %509 = dma.done.wait [#allocation3], 256  }
  0x69   :  { %510 = vsyncadd [#allocation3], 4294967040 }
  0x6a   :  { %511 = dma.done.wait [#allocation6], 1040  }
  0x6b   :  { %512 = vsyncadd [#allocation6], 4294966256 }
  0x6c   :  { %513 = dma.done.wait [#allocation9], 272  }
  0x6d   :  { %514 = vsyncadd [#allocation9], 4294967024 }
  0x6e   :  { %515 = dma.done.wait [#allocation12], 16  }
  0x6f   :  { %516 = vsyncadd [#allocation12], 4294967280  ;;  %vm104_vm0 = vcmask 261120   ;;  %v527_v0 = vmov 0.0   ;;  %v111_v1 = vld [vmem:[#allocation5] sm:$0xff]  ;;  %v112_v2 = vld [vmem:[#allocation5 + $0x8] sm:$0xff] }
  0x70   :  { %106 = vst.msk [vmem:[#allocation13 + $0x8] sm:$0xff] %vm104_vm0, %v527_v0  ;;  %105 = vst.msk [vmem:[#allocation13] sm:$0xff] %vm104_vm0, %v527_v0  ;;  %v113_v3 = vld [vmem:[#allocation5 + $0x10] sm:$0xff]  ;;  %vm119_vm1 = vcmask 523264   ;;  %v325_v4 = vpack.c.bf16 %v112_v2, %v111_v1  ;;  %v114_v5 = vld [vmem:[#allocation5 + $0x18] sm:$0xff]  ;;  %s528_s5 = smov [#allocation13]  }
  0x71   :  { %v329_v6 = vpack.c.bf16 %v114_v5, %v113_v3  ;;  %v115_v7 = vld [vmem:[#allocation5 + $0x20] sm:$0xff]  ;;  %v116_v8 = vld [vmem:[#allocation5 + $0x28] sm:$0xff]  ;;  %v109_v9 = vld [vmem:[#allocation2] sm:$0xff]  ;;  %s276_s21 = sshll.u32 %s528_s5, 4  ;;  %s277_s21 = int_to_ptr.vmem [resolvable:$true] %s276_s21 }
  0x72   :  { %326 = vmatprep.subr.bf16.mxu0 %v325_v4  ;;  %322 = vmatprep.mubr.msk.f32.mxu0 %vm119_vm1, %v109_v9  ;;  %v333_v10 = vpack.c.bf16 %v116_v8, %v115_v7  ;;  %v117_v11 = vld [vmem:[#allocation5 + $0x30] sm:$0xff]  ;;  %v118_v12 = vld [vmem:[#allocation5 + $0x38] sm:$0xff]  ;;  %v293_v21 = vld [vmem:[#allocation7] ss:$0 sm:$0xff]  ;;  %s487_s22 = scalar_lea.vmem %s277_s21, 256  ;;  %p492_p7 = scmp.lt.s32.totalorder %s277_s21, %s277_s21 }
  0x73   :  { %328 = vmatpush3.bf16.msra.mxu0 %v325_v4  ;;  %v337_v13 = vpack.c.bf16 %v118_v12, %v117_v11  ;;  %v110_v14 = vld [vmem:[#allocation2 + $0x8] sm:$0xff]  ;;  %v220_v24 = vld [vmem:[#allocation8] sm:$0xff]  ;;  %v221_v27 = vld [vmem:[#allocation8 + $0x8] sm:$0xff]  ;;  %p488_p6 = scmp.ne.s32.totalorder %s277_s21, %s487_s22  ;;  %p493_p8 = scmp.lt.s32.totalorder %s487_s22, %s487_s22 }
  0x74   :  { %330 = vmatprep.subr.bf16.mxu0 %v329_v6  ;;  %v294_v49 = vld [vmem:[#allocation10] ss:$0 sm:$0xff]  ;;  %v295_v51 = vld [vmem:[#allocation11] ss:$0 sm:$0xff] }
  0x75   :  { %p494_p9 = por %p493_p8, %p492_p7 }
  0x77   :  { %332 = vmatpush3.bf16.msra.mxu0 %v329_v6  ;;  %v108_v15 = vld [vmem:[#allocation13 + $0x8] sm:$0xff]  ;;  %v107_v16 = vld [vmem:[#allocation13] sm:$0xff]  ;;  %p495_p10 = pnand %p494_p9, %p488_p6 }
  0x78   :  { %334 = vmatprep.subr.bf16.mxu0 %v333_v10 }
  0x7b   :  { %336 = vmatpush3.bf16.msra.mxu0 %v333_v10 }
  0x7c   :  { %338 = vmatprep.subr.bf16.mxu0 %v337_v13 }
  0x7f   :  { %340 = vmatpush3.bf16.msra.mxu0 %v337_v13 }
  0x82   :  { %323 = vmatmul.mubr.msk.f32.vlgmr.msra.gmra.mrb[0].mxu0 %vm119_vm1, %v110_v14 }
 0x155   :  { %v324_v17 = vpop.f32.mrb[0].mxu0 }
 0x156   :  { %v202_v18 = vadd.f32 %v324_v17, %v108_v15  ;;  %v192_v19 = vpop.f32.mrb[1].mxu0 }
 0x157   :  { %v201_v20 = vadd.f32 %v192_v19, %v107_v16 }
 0x158   :  { %205 = vst.msk [vmem:[#allocation13 + $0x8] sm:$0xff] %vm104_vm0, %v202_v18 }
 0x159   :  { %204 = vst.msk [vmem:[#allocation13] sm:$0xff] %vm104_vm0, %v201_v20 }
 0x15f   :  { %v210_v22 = vld [vmem:[#allocation13 + $0x8] sm:$0xff] }
 0x160   :  { %v209_v23 = vld [vmem:[#allocation13] sm:$0xff]  ;;  %v219_v26 = vadd.f32 %v293_v21, %v210_v22 }
 0x161   :  { %v218_v25 = vadd.f32 %v293_v21, %v209_v23 }
 0x162   :  { %v223_v30 = vadd.f32 %v221_v27, %v219_v26 }
 0x163   :  { %v222_v28 = vadd.f32 %v220_v24, %v218_v25 }
 0x164   :  { %v227_v31 = vsel %vm104_vm0, %v223_v30, 0.0 }
 0x165   :  { %v224_v29 = vsel %vm104_vm0, %v222_v28, 0.0 }
 0x166   :  { %225 = vadd.xlane.f32.xlu0 %v224_v29 }
 0x16a   :  { %228 = vadd.xlane.f32.xlu0 %v227_v31 }
 0x1f3   :  { %v226_v32 = vpop.xlane.xlu0 %225 }
 0x1f4   :  { %v231_v33 = vmul.f32 0.03125, %v226_v32 }
 0x1f6   :  { %v233_v34 = vsub.f32 %v222_v28, %v231_v33 }
 0x1f7   :  { %v229_v35 = vpop.xlane.xlu0 %228 }
 0x1f8   :  { %v232_v36 = vmul.f32 0.03125, %v229_v35  ;;  %v235_v37 = vmul.f32 %v233_v34, %v233_v34 }
 0x1fa   :  { %v234_v38 = vsub.f32 %v223_v30, %v232_v36  ;;  %v237_v39 = vsel %vm104_vm0, %v235_v37, 0.0 }
 0x1fb   :  { %238 = vadd.xlane.f32.xlu1 %v237_v39 }
 0x1fc   :  { %v236_v40 = vmul.f32 %v234_v38, %v234_v38 }
 0x1fe   :  { %v240_v41 = vsel %vm104_vm0, %v236_v40, 0.0 }
 0x1ff   :  { %241 = vadd.xlane.f32.xlu1 %v240_v41 }
 0x288   :  { %v239_v42 = vpop.xlane.xlu1 %238 }
 0x289   :  { %v243_v43 = vmul.f32 0.03125, %v239_v42 }
 0x28b   :  { %v245_v44 = vadd.f32 1e-05, %v243_v43 }
 0x28c   :  { %v242_v45 = vpop.xlane.xlu1 %241 }
 0x28d   :  { %351 = vrsqrt.f32 %v245_v44  ;;  %v244_v46 = vmul.f32 0.03125, %v242_v45 }
 0x28f   :  { %v246_v47 = vadd.f32 1e-05, %v244_v46 }
 0x291   :  { %353 = vrsqrt.f32 %v246_v47 }
 0x297   :  { %v352_v48 = vpop.eup %351 }
 0x298   :  { %v249_v50 = vmul.f32 %v352_v48, %v233_v34 }
 0x29a   :  { %v258_v52 = vmul.f32 %v294_v49, %v249_v50 }
 0x29b   :  { %v354_v53 = vpop.eup %353 }
 0x29c   :  { %v250_v54 = vmul.f32 %v354_v53, %v234_v38  ;;  %v267_v55 = vadd.f32 %v295_v51, %v258_v52 }
 0x29e   :  { %v259_v56 = vmul.f32 %v294_v49, %v250_v54  ;;  %269 = vst.msk [vmem:[#allocation13] sm:$0xff] %vm104_vm0, %v267_v55 }
 0x2a0   :  { %v268_v57 = vadd.f32 %v295_v51, %v259_v56 }
 0x2a2   :  { %270 = vst.msk [vmem:[#allocation13 + $0x8] sm:$0xff] %vm104_vm0, %v268_v57 }
 0x2a3   :  { %498 = shalt.err (!%p495_p10)
}
 0x2a4   :  { %s499_s27 = scalar_lea.hbm %s685_s6, 256 }
 0x2a5   :  { %p500_p11 = scmp.ne.s32.totalorder %s685_s6, %s499_s27  ;;  %p503_p12 = scmp.lt.u32.totalorder %s499_s27, %s685_s6 }
 0x2a7   :  { %p505_p13 = pnand %p503_p12, %p500_p11 }
 0x2a9   :  { %508 = shalt.err (!%p505_p13)
}
 0x2aa   :  { %282 = dma.vmem_to_hbm [thread:$0]  %s277_s21, 256, %s685_s6, [#allocation4], %s521_s9, %s521_s9, %s522_s10  }
 0x2ab   :  { %517 = dma.done.wait [#allocation4], 256  }
 0x2ac   :  { %518 = vsyncadd [#allocation4], 4294967040 }
 0x2ad   :  { %286 = vsyncpa [#allocation3], 1 }
 0x2ae   :  { %287 = vsyncpa [#allocation6], 1 }
 0x2af   :  { %288 = vsyncpa [#allocation9], 1 }
 0x2b0   :  { %289 = vsyncpa [#allocation12], 1 }
 0x2b1   :  { %290 = vsyncpa [#allocation4], 1 }

// kernel: decoder_forward.17
= control target key start
LH: loop header
LB: loop body
LE: loop exit
PB: predicated region body
PF: predicated region fallthrough
CT: control target
= control target key end

     0   :  { %8 = vsyncpa [#allocation3], 0  ;;  %s418_s0 = inlined_call_operand.hbm [shape: f32[16,32], index: 0, kind: input, shape index: {}]   ;;  %s419_s1 = inlined_call_operand.hbm [shape: f32[32,64], index: 1, kind: input, shape index: {}]   ;;  %s420_s2 = inlined_call_operand.hbm [shape: f32[1,64], index: 2, kind: input, shape index: {}]   ;;  %s421_s3 = inlined_call_operand.hbm [shape: f32[16,64], index: 3, kind: output, shape index: {}]  }
   0x1   :  { %9 = vsyncpa [#allocation6], 0 }
   0x2   :  { %10 = vsyncpa [#allocation4], 0  ;;  %s321_s12 = smov [#allocation5]   ;;  %s322_s14 = smov [#allocation2]  }
   0x3   :  { %s28_s13 = sshll.u32 %s321_s12, 4  ;;  %s16_s15 = sshll.u32 %s322_s14, 4  ;;  %s29_s13 = int_to_ptr.vmem [resolvable:$true] %s28_s13  ;;  %s348_s15 = int_to_ptr.vmem [resolvable:$true] %s16_s15 }
   0x4   :  { %s227_s18 = scalar_lea.hbm %s419_s1, 512 }
   0x5   :  { %p228_p0 = scmp.ne.s32.totalorder %s419_s1, %s227_s18  ;;  %p231_p1 = scmp.lt.u32.totalorder %s227_s18, %s419_s1 }
   0x7   :  { %p233_p2 = pnand %p231_p1, %p228_p0 }
   0x9   :  { %236 = shalt.err (!%p233_p2)
}
   0xa   :  { %s237_s23 = scalar_lea.vmem %s29_s13, 512  ;;  %p242_p4 = scmp.lt.s32.totalorder %s29_s13, %s29_s13 }
   0xb   :  { %p238_p3 = scmp.ne.s32.totalorder %s29_s13, %s237_s23  ;;  %p243_p5 = scmp.lt.s32.totalorder %s237_s23, %s237_s23 }
   0xd   :  { %p244_p6 = por %p243_p5, %p242_p4 }
   0xf   :  { %p245_p7 = pnand %p244_p6, %p238_p3 }
  0x11   :  { %248 = shalt.err (!%p245_p7)
}
  0x12   :  { %s323_s24 = smov 128   ;;  %s324_s25 = smov 8  }
  0x13   :  { %34 = dma.hbm_to_vmem [thread:$0]  %s419_s1, 512, %s29_s13, [#allocation6], %s323_s24, %s323_s24, %s324_s25  }
  0x14   :  { %s249_s30 = scalar_lea.hbm %s418_s0, 256 }
  0x15   :  { %p250_p8 = scmp.ne.s32.totalorder %s418_s0, %s249_s30  ;;  %p253_p9 = scmp.lt.u32.totalorder %s249_s30, %s418_s0 }
  0x17   :  { %p255_p10 = pnand %p253_p9, %p250_p8 }
  0x19   :  { %258 = shalt.err (!%p255_p10)
}
  0x1a   :  { %s259_s8 = scalar_lea.vmem %s348_s15, 256  ;;  %p264_p12 = scmp.lt.s32.totalorder %s348_s15, %s348_s15 }
  0x1b   :  { %p260_p11 = scmp.ne.s32.totalorder %s348_s15, %s259_s8  ;;  %p265_p13 = scmp.lt.s32.totalorder %s259_s8, %s259_s8 }
  0x1d   :  { %p266_p0 = por %p265_p13, %p264_p12 }
  0x1f   :  { %p267_p1 = pnand %p266_p0, %p260_p11 }
  0x21   :  { %270 = shalt.err (!%p267_p1)
}
  0x22   :  { %22 = dma.hbm_to_vmem [thread:$0]  %s418_s0, 256, %s348_s15, [#allocation3], %s323_s24, %s323_s24, %s324_s25  }
  0x23   :  { %s325_s10 = smov [#allocation7]   ;;  %s271_s14 = scalar_lea.hbm %s420_s2, 16 }
  0x24   :  { %s41_s11 = sshll.u32 %s325_s10, 4  ;;  %p272_p2 = scmp.ne.s32.totalorder %s420_s2, %s271_s14  ;;  %s42_s11 = int_to_ptr.vmem [resolvable:$true] %s41_s11 }
  0x25   :  { %p275_p3 = scmp.lt.u32.totalorder %s271_s14, %s420_s2 }
  0x27   :  { %p277_p4 = pnand %p275_p3, %p272_p2 }
  0x29   :  { %280 = shalt.err (!%p277_p4)
}
  0x2a   :  { %s281_s20 = scalar_lea.vmem %s42_s11, 16  ;;  %s285_s0 = scalar_lea.vmem %s42_s11, 32 }
  0x2b   :  { %p282_p5 = scmp.ne.s32.totalorder %s42_s11, %s281_s20  ;;  %p286_p6 = scmp.lt.s32.totalorder %s42_s11, %s42_s11 }
  0x2c   :  { %p287_p7 = scmp.lt.s32.totalorder %s285_s0, %s281_s20 }
  0x2e   :  { %p288_p8 = por %p287_p7, %p286_p6 }
  0x30   :  { %p289_p9 = pnand %p288_p8, %p282_p5 }
  0x32   :  { %292 = shalt.err (!%p289_p9)
}
  0x33   :  { %44 = dma.hbm_to_vmem [thread:$0]  %s420_s2, 16, %s42_s11, [#allocation6]  }
  0x34   :  { %315 = dma.done.wait [#allocation3], 256  }
  0x35   :  { %316 = vsyncadd [#allocation3], 4294967040 }
  0x36   :  { %317 = dma.done.wait [#allocation6], 528  }
  0x37   :  { %318 = vsyncadd [#allocation6], 4294966768  ;;  %vm58_vm0 = vcmask 523264   ;;  %v326_v0 = vmov 0.0   ;;  %vm69_vm1 = vcmask 261120   ;;  %v65_v1 = vld [vmem:[#allocation5] sm:$0xff] }
  0x38   :  { %60 = vst.msk [vmem:[#allocation8 + $0x8] sm:$0xff] %vm58_vm0, %v326_v0  ;;  %59 = vst.msk [vmem:[#allocation8] sm:$0xff] %vm58_vm0, %v326_v0  ;;  %v66_v2 = vld [vmem:[#allocation5 + $0x8] sm:$0xff]  ;;  %v67_v3 = vld [vmem:[#allocation5 + $0x10] sm:$0xff]  ;;  %s327_s2 = smov [#allocation8]  }
  0x39   :  { %v212_v4 = vpack.c.bf16 %v66_v2, %v65_v1  ;;  %v68_v5 = vld [vmem:[#allocation5 + $0x18] sm:$0xff]  ;;  %v63_v6 = vld [vmem:[#allocation2] sm:$0xff]  ;;  %v194_v15 = vld [vmem:[#allocation7] ss:$0 sm:$0xff]  ;;  %s179_s22 = sshll.u32 %s327_s2, 4  ;;  %s180_s22 = int_to_ptr.vmem [resolvable:$true] %s179_s22 }
  0x3a   :  { %v216_v7 = vpack.c.bf16 %v68_v5, %v67_v3  ;;  %209 = vmatprep.mubr.msk.f32.mxu0 %vm69_vm1, %v63_v6  ;;  %v64_v8 = vld [vmem:[#allocation2 + $0x8] sm:$0xff]  ;;  %s293_s23 = scalar_lea.vmem %s180_s22, 256  ;;  %p298_p11 = scmp.lt.s32.totalorder %s180_s22, %s180_s22 }
  0x3b   :  { %213 = vmatprep.subr.bf16.mxu0 %v212_v4  ;;  %p294_p10 = scmp.ne.s32.totalorder %s180_s22, %s293_s23  ;;  %p299_p12 = scmp.lt.s32.totalorder %s293_s23, %s293_s23 }
  0x3c   :  { %215 = vmatpush3.bf16.msra.mxu0 %v212_v4 }
  0x3d   :  { %217 = vmatprep.subr.bf16.mxu0 %v216_v7  ;;  %p300_p13 = por %p299_p12, %p298_p11 }
  0x3f   :  { %v62_v9 = vld [vmem:[#allocation8 + $0x8] sm:$0xff]  ;;  %v61_v10 = vld [vmem:[#allocation8] sm:$0xff]  ;;  %p301_p0 = pnand %p300_p13, %p294_p10 }
  0x40   :  { %219 = vmatpush3.bf16.msra.mxu0 %v216_v7 }
  0x43   :  { %210 = vmatmul.mubr.msk.f32.vlgmr.msra.gmra.mrb[0].mxu0 %vm69_vm1, %v64_v8 }
 0x116   :  { %v211_v11 = vpop.f32.mrb[0].mxu0 }
 0x117   :  { %v152_v12 = vadd.f32 %v211_v11, %v62_v9  ;;  %v142_v13 = vpop.f32.mrb[1].mxu0 }
 0x118   :  { %v151_v14 = vadd.f32 %v142_v13, %v61_v10 }
 0x119   :  { %155 = vst.msk [vmem:[#allocation8 + $0x8] sm:$0xff] %vm58_vm0, %v152_v12 }
 0x11a   :  { %154 = vst.msk [vmem:[#allocation8] sm:$0xff] %vm58_vm0, %v151_v14 }
 0x120   :  { %v160_v16 = vld [vmem:[#allocation8 + $0x8] sm:$0xff] }
 0x121   :  { %v159_v17 = vld [vmem:[#allocation8] sm:$0xff]  ;;  %v169_v18 = vadd.f32 %v194_v15, %v160_v16 }
 0x122   :  { %v168_v19 = vadd.f32 %v194_v15, %v159_v17 }
 0x123   :  { %v171_v20 = vmax.f32 %v169_v18, 0.0 }
 0x124   :  { %v170_v21 = vmax.f32 %v168_v19, 0.0 }
 0x125   :  { %173 = vst.msk [vmem:[#allocation8 + $0x8] sm:$0xff] %vm58_vm0, %v171_v20 }
 0x126   :  { %172 = vst.msk [vmem:[#allocation8] sm:$0xff] %vm58_vm0, %v170_v21 }
 0x127   :  { %304 = shalt.err (!%p301_p0)
}
 0x128   :  { %s305_s28 = scalar_lea.hbm %s421_s3, 256 }
 0x129   :  { %p306_p1 = scmp.ne.s32.totalorder %s421_s3, %s305_s28  ;;  %p309_p2 = scmp.lt.u32.totalorder %s305_s28, %s421_s3 }
 0x12b   :  { %p311_p3 = pnand %p309_p2, %p306_p1 }
 0x12d   :  { %314 = shalt.err (!%p311_p3)
}
 0x12e   :  { %185 = dma.vmem_to_hbm [thread:$0]  %s180_s22, 256, %s421_s3, [#allocation4], %s323_s24, %s323_s24, %s324_s25  }
 0x12f   :  { %319 = dma.done.wait [#allocation4], 256  }
 0x130   :  { %320 = vsyncadd [#allocation4], 4294967040 }
 0x131   :  { %189 = vsyncpa [#allocation3], 1 }
 0x132   :  { %190 = vsyncpa [#allocation6], 1 }
 0x133   :  { %191 = vsyncpa [#allocation4], 1 }

// kernel: decoder_forward.14
= control target key start
LH: loop header
LB: loop body
LE: loop exit
PB: predicated region body
PF: predicated region fallthrough
CT: control target
= control target key end

     0   :  { %11 = vsyncpa [#allocation3], 0  ;;  %s654_s0 = inlined_call_operand.hbm [shape: f32[16,32], index: 0, kind: input, shape index: {}]   ;;  %s655_s1 = inlined_call_operand.hbm [shape: f32[32,32], index: 1, kind: input, shape index: {}]   ;;  %s656_s2 = inlined_call_operand.hbm [shape: f32[1,32], index: 2, kind: input, shape index: {}]   ;;  %s657_s3 = inlined_call_operand.hbm [shape: f32[16,32], index: 3, kind: input, shape index: {}]   ;;  %s658_s4 = inlined_call_operand.hbm [shape: f32[1,32], index: 4, kind: input, shape index: {}]   ;;  %s659_s5 = inlined_call_operand.hbm [shape: f32[1,32], index: 5, kind: input, shape index: {}]   ;;  %s660_s6 = inlined_call_operand.hbm [shape: f32[16,32], index: 6, kind: output, shape index: {}]  }
   0x1   :  { %12 = vsyncpa [#allocation6], 0 }
   0x2   :  { %13 = vsyncpa [#allocation9], 0 }
   0x3   :  { %14 = vsyncpa [#allocation12], 0 }
   0x4   :  { %15 = vsyncpa [#allocation4], 0  ;;  %s494_s21 = smov [#allocation5]   ;;  %s495_s23 = smov [#allocation8]  }
   0x5   :  { %s33_s22 = sshll.u32 %s494_s21, 4  ;;  %s55_s24 = sshll.u32 %s495_s23, 4  ;;  %s34_s22 = int_to_ptr.vmem [resolvable:$true] %s33_s22  ;;  %s539_s24 = int_to_ptr.vmem [resolvable:$true] %s55_s24 }
   0x6   :  { %s330_s27 = scalar_lea.hbm %s655_s1, 512 }
   0x7   :  { %p331_p0 = scmp.ne.s32.totalorder %s655_s1, %s330_s27  ;;  %p334_p1 = scmp.lt.u32.totalorder %s330_s27, %s655_s1 }
   0x9   :  { %p336_p2 = pnand %p334_p1, %p331_p0 }
   0xb   :  { %339 = shalt.err (!%p336_p2)
}
   0xc   :  { %s340_s8 = scalar_lea.vmem %s34_s22, 512  ;;  %p345_p4 = scmp.lt.s32.totalorder %s34_s22, %s34_s22 }
   0xd   :  { %p341_p3 = scmp.ne.s32.totalorder %s34_s22, %s340_s8  ;;  %p346_p5 = scmp.lt.s32.totalorder %s340_s8, %s340_s8 }
   0xf   :  { %p347_p6 = por %p346_p5, %p345_p4 }
  0x11   :  { %p348_p7 = pnand %p347_p6, %p341_p3 }
  0x13   :  { %351 = shalt.err (!%p348_p7)
}
  0x14   :  { %s496_s9 = smov 128   ;;  %s497_s10 = smov 8  }
  0x15   :  { %39 = dma.hbm_to_vmem [thread:$0]  %s655_s1, 512, %s34_s22, [#allocation6], %s496_s9, %s496_s9, %s497_s10  }
  0x16   :  { %s352_s15 = scalar_lea.hbm %s657_s3, 256 }
  0x17   :  { %p353_p8 = scmp.ne.s32.totalorder %s657_s3, %s352_s15  ;;  %p356_p9 = scmp.lt.u32.totalorder %s352_s15, %s657_s3 }
  0x19   :  { %p358_p10 = pnand %p356_p9, %p353_p8 }
  0x1b   :  { %361 = shalt.err (!%p358_p10)
}
  0x1c   :  { %s362_s20 = scalar_lea.vmem %s539_s24, 256  ;;  %p367_p12 = scmp.lt.s32.totalorder %s539_s24, %s539_s24 }
  0x1d   :  { %p363_p11 = scmp.ne.s32.totalorder %s539_s24, %s362_s20  ;;  %p368_p13 = scmp.lt.s32.totalorder %s362_s20, %s362_s20 }
  0x1f   :  { %p369_p0 = por %p368_p13, %p367_p12 }
  0x21   :  { %p370_p1 = pnand %p369_p0, %p363_p11 }
  0x23   :  { %373 = shalt.err (!%p370_p1)
}
  0x24   :  { %61 = dma.hbm_to_vmem [thread:$0]  %s657_s3, 256, %s539_s24, [#allocation9], %s496_s9, %s496_s9, %s497_s10  }
  0x25   :  { %s498_s22 = smov [#allocation2]   ;;  %s499_s25 = smov [#allocation7]  }
  0x26   :  { %s21_s23 = sshll.u32 %s498_s22, 4  ;;  %s46_s26 = sshll.u32 %s499_s25, 4  ;;  %s22_s23 = int_to_ptr.vmem [resolvable:$true] %s21_s23  ;;  %s47_s26 = int_to_ptr.vmem [resolvable:$true] %s46_s26 }
  0x27   :  { %s374_s29 = scalar_lea.hbm %s654_s0, 256 }
  0x28   :  { %p375_p2 = scmp.ne.s32.totalorder %s654_s0, %s374_s29  ;;  %p378_p3 = scmp.lt.u32.totalorder %s374_s29, %s654_s0 }
  0x2a   :  { %p380_p4 = pnand %p378_p3, %p375_p2 }
  0x2c   :  { %383 = shalt.err (!%p380_p4)
}
  0x2d   :  { %s384_s3 = scalar_lea.vmem %s22_s23, 256  ;;  %p389_p6 = scmp.lt.s32.totalorder %s22_s23, %s22_s23 }
  0x2e   :  { %p385_p5 = scmp.ne.s32.totalorder %s22_s23, %s384_s3  ;;  %p390_p7 = scmp.lt.s32.totalorder %s384_s3, %s384_s3 }
  0x30   :  { %p391_p8 = por %p390_p7, %p389_p6 }
  0x32   :  { %p392_p9 = pnand %p391_p8, %p385_p5 }
  0x34   :  { %395 = shalt.err (!%p392_p9)
}
  0x35   :  { %27 = dma.hbm_to_vmem [thread:$0]  %s654_s0, 256, %s22_s23, [#allocation3], %s496_s9, %s496_s9, %s497_s10  }
  0x36   :  { %s396_s15 = scalar_lea.hbm %s656_s2, 16 }
  0x37   :  { %p397_p10 = scmp.ne.s32.totalorder %s656_s2, %s396_s15  ;;  %p400_p11 = scmp.lt.u32.totalorder %s396_s15, %s656_s2 }
  0x39   :  { %p402_p12 = pnand %p400_p11, %p397_p10 }
  0x3b   :  { %405 = shalt.err (!%p402_p12)
}
  0x3c   :  { %s406_s20 = scalar_lea.vmem %s47_s26, 16  ;;  %s410_s1 = scalar_lea.vmem %s47_s26, 32 }
  0x3d   :  { %p407_p13 = scmp.ne.s32.totalorder %s47_s26, %s406_s20  ;;  %p411_p0 = scmp.lt.s32.totalorder %s47_s26, %s47_s26 }
  0x3e   :  { %p412_p1 = scmp.lt.s32.totalorder %s410_s1, %s406_s20 }
  0x40   :  { %p413_p2 = por %p412_p1, %p411_p0 }
  0x42   :  { %p414_p3 = pnand %p413_p2, %p407_p13 }
  0x44   :  { %417 = shalt.err (!%p414_p3)
}
  0x45   :  { %49 = dma.hbm_to_vmem [thread:$0]  %s656_s2, 16, %s47_s26, [#allocation6]  }
  0x46   :  { %s500_s22 = smov [#allocation10]   ;;  %s501_s25 = smov [#allocation11]  }
  0x47   :  { %s68_s23 = sshll.u32 %s500_s22, 4  ;;  %s78_s27 = sshll.u32 %s501_s25, 4  ;;  %s69_s23 = int_to_ptr.vmem [resolvable:$true] %s68_s23  ;;  %s79_s27 = int_to_ptr.vmem [resolvable:$true] %s78_s27 }
  0x48   :  { %s418_s30 = scalar_lea.hbm %s658_s4, 16 }
  0x49   :  { %p419_p4 = scmp.ne.s32.totalorder %s658_s4, %s418_s30  ;;  %p422_p5 = scmp.lt.u32.totalorder %s418_s30, %s658_s4 }
  0x4b   :  { %p424_p6 = pnand %p422_p5, %p419_p4 }
  0x4d   :  { %427 = shalt.err (!%p424_p6)
}
  0x4e   :  { %s428_s2 = scalar_lea.vmem %s69_s23, 16  ;;  %s432_s26 = scalar_lea.vmem %s69_s23, 32 }
  0x4f   :  { %p429_p7 = scmp.ne.s32.totalorder %s69_s23, %s428_s2  ;;  %p433_p8 = scmp.lt.s32.totalorder %s69_s23, %s69_s23 }
  0x50   :  { %p434_p9 = scmp.lt.s32.totalorder %s432_s26, %s428_s2 }
  0x52   :  { %p435_p10 = por %p434_p9, %p433_p8 }
  0x54   :  { %p436_p11 = pnand %p435_p10, %p429_p7 }
  0x56   :  { %439 = shalt.err (!%p436_p11)
}
  0x57   :  { %71 = dma.hbm_to_vmem [thread:$0]  %s658_s4, 16, %s69_s23, [#allocation9]  }
  0x58   :  { %s440_s15 = scalar_lea.hbm %s659_s5, 16 }
  0x59   :  { %p441_p12 = scmp.ne.s32.totalorder %s659_s5, %s440_s15  ;;  %p444_p13 = scmp.lt.u32.totalorder %s440_s15, %s659_s5 }
  0x5b   :  { %p446_p0 = pnand %p444_p13, %p441_p12 }
  0x5d   :  { %449 = shalt.err (!%p446_p0)
}
  0x5e   :  { %s450_s20 = scalar_lea.vmem %s79_s27, 16  ;;  %s454_s1 = scalar_lea.vmem %s79_s27, 32 }
  0x5f   :  { %p451_p1 = scmp.ne.s32.totalorder %s79_s27, %s450_s20  ;;  %p455_p2 = scmp.lt.s32.totalorder %s79_s27, %s79_s27 }
  0x60   :  { %p456_p3 = scmp.lt.s32.totalorder %s454_s1, %s450_s20 }
  0x62   :  { %p457_p4 = por %p456_p3, %p455_p2 }
  0x64   :  { %p458_p5 = pnand %p457_p4, %p451_p1 }
  0x66   :  { %461 = shalt.err (!%p458_p5)
}
  0x67   :  { %81 = dma.hbm_to_vmem [thread:$0]  %s659_s5, 16, %s79_s27, [#allocation12]  }
  0x68   :  { %484 = dma.done.wait [#allocation3], 256  }
  0x69   :  { %485 = vsyncadd [#allocation3], 4294967040 }
  0x6a   :  { %486 = dma.done.wait [#allocation6], 528  }
  0x6b   :  { %487 = vsyncadd [#allocation6], 4294966768 }
  0x6c   :  { %488 = dma.done.wait [#allocation9], 272  }
  0x6d   :  { %489 = vsyncadd [#allocation9], 4294967024 }
  0x6e   :  { %490 = dma.done.wait [#allocation12], 16  }
  0x6f   :  { %491 = vsyncadd [#allocation12], 4294967280  ;;  %vm104_vm0 = vcmask 261120   ;;  %v502_v0 = vmov 0.0   ;;  %v111_v1 = vld [vmem:[#allocation5] sm:$0xff]  ;;  %v112_v2 = vld [vmem:[#allocation5 + $0x8] sm:$0xff] }
  0x70   :  { %106 = vst.msk [vmem:[#allocation13 + $0x8] sm:$0xff] %vm104_vm0, %v502_v0  ;;  %105 = vst.msk [vmem:[#allocation13] sm:$0xff] %vm104_vm0, %v502_v0  ;;  %v113_v3 = vld [vmem:[#allocation5 + $0x10] sm:$0xff]  ;;  %v308_v4 = vpack.c.bf16 %v112_v2, %v111_v1  ;;  %v114_v5 = vld [vmem:[#allocation5 + $0x18] sm:$0xff]  ;;  %s503_s5 = smov [#allocation13]  }
  0x71   :  { %v109_v6 = vld [vmem:[#allocation2] sm:$0xff]  ;;  %v312_v7 = vpack.c.bf16 %v114_v5, %v113_v3  ;;  %v110_v8 = vld [vmem:[#allocation2 + $0x8] sm:$0xff]  ;;  %v288_v15 = vld [vmem:[#allocation7] ss:$0 sm:$0xff]  ;;  %s271_s21 = sshll.u32 %s503_s5, 4  ;;  %s272_s21 = int_to_ptr.vmem [resolvable:$true] %s271_s21 }
  0x72   :  { %305 = vmatprep.mubr.msk.f32.mxu0 %vm104_vm0, %v109_v6  ;;  %309 = vmatprep.subr.bf16.mxu0 %v308_v4  ;;  %v215_v18 = vld [vmem:[#allocation8] sm:$0xff]  ;;  %v216_v21 = vld [vmem:[#allocation8 + $0x8] sm:$0xff]  ;;  %v289_v43 = vld [vmem:[#allocation10] ss:$0 sm:$0xff]  ;;  %s462_s22 = scalar_lea.vmem %s272_s21, 256  ;;  %p467_p7 = scmp.lt.s32.totalorder %s272_s21, %s272_s21 }
  0x73   :  { %311 = vmatpush3.bf16.msra.mxu0 %v308_v4  ;;  %v290_v45 = vld [vmem:[#allocation11] ss:$0 sm:$0xff]  ;;  %p463_p6 = scmp.ne.s32.totalorder %s272_s21, %s462_s22  ;;  %p468_p8 = scmp.lt.s32.totalorder %s462_s22, %s462_s22 }
  0x74   :  { %313 = vmatprep.subr.bf16.mxu0 %v312_v7 }
  0x75   :  { %p469_p9 = por %p468_p8, %p467_p7 }
  0x77   :  { %315 = vmatpush3.bf16.msra.mxu0 %v312_v7  ;;  %v108_v9 = vld [vmem:[#allocation13 + $0x8] sm:$0xff]  ;;  %v107_v10 = vld [vmem:[#allocation13] sm:$0xff]  ;;  %p470_p10 = pnand %p469_p9, %p463_p6 }
  0x7a   :  { %306 = vmatmul.mubr.msk.f32.vlgmr.msra.gmra.mrb[0].mxu0 %vm104_vm0, %v110_v8 }
 0x14d   :  { %v307_v11 = vpop.f32.mrb[0].mxu0 }
 0x14e   :  { %v198_v12 = vadd.f32 %v307_v11, %v108_v9  ;;  %v188_v13 = vpop.f32.mrb[1].mxu0 }
 0x14f   :  { %v197_v14 = vadd.f32 %v188_v13, %v107_v10 }
 0x150   :  { %200 = vst.msk [vmem:[#allocation13 + $0x8] sm:$0xff] %vm104_vm0, %v198_v12 }
 0x151   :  { %199 = vst.msk [vmem:[#allocation13] sm:$0xff] %vm104_vm0, %v197_v14 }
 0x157   :  { %v205_v16 = vld [vmem:[#allocation13 + $0x8] sm:$0xff] }
 0x158   :  { %v204_v17 = vld [vmem:[#allocation13] sm:$0xff]  ;;  %v214_v20 = vadd.f32 %v288_v15, %v205_v16 }
 0x159   :  { %v213_v19 = vadd.f32 %v288_v15, %v204_v17 }
 0x15a   :  { %v218_v24 = vadd.f32 %v216_v21, %v214_v20 }
 0x15b   :  { %v217_v22 = vadd.f32 %v215_v18, %v213_v19 }
 0x15c   :  { %v222_v25 = vsel %vm104_vm0, %v218_v24, 0.0 }
 0x15d   :  { %v219_v23 = vsel %vm104_vm0, %v217_v22, 0.0 }
 0x15e   :  { %220 = vadd.xlane.f32.xlu0 %v219_v23 }
 0x162   :  { %223 = vadd.xlane.f32.xlu0 %v222_v25 }
 0x1eb   :  { %v221_v26 = vpop.xlane.xlu0 %220 }
 0x1ec   :  { %v226_v27 = vmul.f32 0.03125, %v221_v26 }
 0x1ee   :  { %v228_v28 = vsub.f32 %v217_v22, %v226_v27 }
 0x1ef   :  { %v224_v29 = vpop.xlane.xlu0 %223 }
 0x1f0   :  { %v227_v30 = vmul.f32 0.03125, %v224_v29  ;;  %v230_v31 = vmul.f32 %v228_v28, %v228_v28 }
 0x1f2   :  { %v229_v32 = vsub.f32 %v218_v24, %v227_v30  ;;  %v232_v33 = vsel %vm104_vm0, %v230_v31, 0.0 }
 0x1f3   :  { %233 = vadd.xlane.f32.xlu1 %v232_v33 }
 0x1f4   :  { %v231_v34 = vmul.f32 %v229_v32, %v229_v32 }
 0x1f6   :  { %v235_v35 = vsel %vm104_vm0, %v231_v34, 0.0 }
 0x1f7   :  { %236 = vadd.xlane.f32.xlu1 %v235_v35 }
 0x280   :  { %v234_v36 = vpop.xlane.xlu1 %233 }
 0x281   :  { %v238_v37 = vmul.f32 0.03125, %v234_v36 }
 0x283   :  { %v240_v38 = vadd.f32 1e-05, %v238_v37 }
 0x284   :  { %v237_v39 = vpop.xlane.xlu1 %236 }
 0x285   :  { %326 = vrsqrt.f32 %v240_v38  ;;  %v239_v40 = vmul.f32 0.03125, %v237_v39 }
 0x287   :  { %v241_v41 = vadd.f32 1e-05, %v239_v40 }
 0x289   :  { %328 = vrsqrt.f32 %v241_v41 }
 0x28f   :  { %v327_v42 = vpop.eup %326 }
 0x290   :  { %v244_v44 = vmul.f32 %v327_v42, %v228_v28 }
 0x292   :  { %v253_v46 = vmul.f32 %v289_v43, %v244_v44 }
 0x293   :  { %v329_v47 = vpop.eup %328 }
 0x294   :  { %v245_v48 = vmul.f32 %v329_v47, %v229_v32  ;;  %v262_v49 = vadd.f32 %v290_v45, %v253_v46 }
 0x296   :  { %v254_v50 = vmul.f32 %v289_v43, %v245_v48  ;;  %264 = vst.msk [vmem:[#allocation13] sm:$0xff] %vm104_vm0, %v262_v49 }
 0x298   :  { %v263_v51 = vadd.f32 %v290_v45, %v254_v50 }
 0x29a   :  { %265 = vst.msk [vmem:[#allocation13 + $0x8] sm:$0xff] %vm104_vm0, %v263_v51 }
 0x29b   :  { %473 = shalt.err (!%p470_p10)
}
 0x29c   :  { %s474_s27 = scalar_lea.hbm %s660_s6, 256 }
 0x29d   :  { %p475_p11 = scmp.ne.s32.totalorder %s660_s6, %s474_s27  ;;  %p478_p12 = scmp.lt.u32.totalorder %s474_s27, %s660_s6 }
 0x29f   :  { %p480_p13 = pnand %p478_p12, %p475_p11 }
 0x2a1   :  { %483 = shalt.err (!%p480_p13)
}
 0x2a2   :  { %277 = dma.vmem_to_hbm [thread:$0]  %s272_s21, 256, %s660_s6, [#allocation4], %s496_s9, %s496_s9, %s497_s10  }
 0x2a3   :  { %492 = dma.done.wait [#allocation4], 256  }
 0x2a4   :  { %493 = vsyncadd [#allocation4], 4294967040 }
 0x2a5   :  { %281 = vsyncpa [#allocation3], 1 }
 0x2a6   :  { %282 = vsyncpa [#allocation6], 1 }
 0x2a7   :  { %283 = vsyncpa [#allocation9], 1 }
 0x2a8   :  { %284 = vsyncpa [#allocation12], 1 }
 0x2a9   :  { %285 = vsyncpa [#allocation4], 1 }

// kernel: decoder_forward.13
= control target key start
LH: loop header
LB: loop body
LE: loop exit
PB: predicated region body
PF: predicated region fallthrough
CT: control target
= control target key end

     0   :  { %8 = vsyncpa [#allocation3], 0  ;;  %s1425_s0 = inlined_call_operand.hbm [shape: f32[2,8,32], index: 0, kind: input, shape index: {}]   ;;  %s1426_s1 = inlined_call_operand.hbm [shape: f32[32,96], index: 1, kind: input, shape index: {}]   ;;  %s1427_s2 = inlined_call_operand.hbm [shape: f32[1,96], index: 2, kind: input, shape index: {}]   ;;  %s1428_s3 = inlined_call_operand.hbm [shape: f32[2,4,8,8], index: 3, kind: output, shape index: {}]  }
   0x1   :  { %10 = vsyncpa [#allocation3 + $0x1], 0 }
   0x2   :  { %11 = vsyncpa [#allocation6], 0 }
   0x3   :  { %12 = vsyncpa [#allocation4], 0 }
   0x4   :  { %14 = vsyncpa [#allocation4 + $0x1], 0  ;;  %s1107_s12 = smov 0   ;;  %s1109_s13 = smov 0  }
   0x5   :  { %s1111_s14 = smov 0   ;;  %s1113_s15 = smov 0  }
   0x6   :  { %s1115_s16 = smov 0   ;;  %s1117_s17 = smov 0  }
   0x7 LB: > { %s713_s18 = sadd.s32 4294967295, %s1066_s17   ;;  %s714_s19 = sadd.s32 4294967294, %s1066_s17   ;;  %s1066_s17 = sphi %s1117_s17, %s20_s17   ;;  %s1062_s16 = sphi %s1115_s16, %s1450_s16   ;;  %s1058_s15 = sphi %s1113_s15, %s1449_s15   ;;  %s1054_s14 = sphi %s1111_s14, %s1448_s14   ;;  %s1050_s13 = sphi %s1109_s13, %s1447_s13   ;;  %s1046_s12 = sphi %s1107_s12, %s1446_s12  }
   0x8   : > { %p54_p0 = scmp.ne.s32.totalorder %s1050_s13, %s1046_s12  ;;  %p1141_p1 = scmp.eq.s32.totalorder %s713_s18, 0 }
   0x9   : > { %p1145_p2 = scmp.eq.s32.totalorder %s713_s18, 1  ;;  %p128_p3 = scmp.eq.s32.totalorder %s714_s19, 1 }
   0xa   : > { %s1433_s20 = scalar_select %p1141_p1, 1, 0 }
   0xb   : > { %p1151_p4 = por %p1141_p1, %p54_p0  ;;  %p715_p5 = scmp.ge.s32.totalorder %s1066_s17, 1 }
   0xc   : > { %p1156_p6 = por %p128_p3, %p54_p0  ;;  %p135_p7 = scmp.lt.s32.totalorder %s1066_s17, 3 }
   0xd   : > { %s1435_s22 = scalar_select %p1151_p4, 1, 0 }
   0xe   : > { %s1436_s23 = scalar_select %p1156_p6, 1, 0 }
   0xf   : > { %p1161_p8 = pnand %p715_p5, %p135_p7  ;;  %s1068_s25 = smov [#allocation5]  }
  0x10   : > { %s147_s26 = sshll.u32 %s1068_s25, 4  ;;  %s1069_s28 = smov [#allocation7]   ;;  %s1165_s26 = int_to_ptr.vmem [resolvable:$true] %s147_s26 }
  0x11   : > { %p768_p9 = pneg %p1161_p8  ;;  %s161_s29 = sshll.u32 %s1069_s28, 4  ;;  %s1176_s29 = int_to_ptr.vmem [resolvable:$true] %s161_s29 }
  0x12   : > { %s894_s5 = scalar_lea.hbm %s1426_s1, 512 }
  0x13   : > { %p1172_p11 = pnand %p768_p9, %p1141_p1  ;;  %p895_p12 = scmp.ne.s32.totalorder %s1426_s1, %s894_s5 }
  0x14   : > { %p901_p5 = scmp.lt.u32.totalorder %s894_s5, %s1426_s1 }
  0x15   : > { %p896_p13 = pneg %p1172_p11 }
  0x17   : > { %p897_p0 = pnand %p896_p13, %p895_p12 }
  0x19   : > { %p898_p3 = pneg %p897_p0 }
  0x1b   : > { %p903_p7 = pnand %p901_p5, %p898_p3 }
  0x1d   : > { %906 = shalt.err (!%p903_p7)
}
  0x1e   : > { %s907_s10 = scalar_lea.vmem %s1165_s26, 512  ;;  %p915_p1 = scmp.lt.s32.totalorder %s1165_s26, %s1165_s26 }
  0x1f   : > { %p908_p9 = scmp.ne.s32.totalorder %s1165_s26, %s907_s10  ;;  %p916_p12 = scmp.lt.s32.totalorder %s907_s10, %s907_s10 }
  0x21   : > { %p910_p10 = pnand %p908_p9, %p896_p13  ;;  %p917_p0 = por %p916_p12, %p915_p1 }
  0x23   : > { %p911_p6 = pneg %p910_p10 }
  0x25   : > { %p918_p4 = pnand %p917_p0, %p911_p6 }
  0x27   : > { %921 = shalt.err (!%p918_p4)
}
  0x28   : > { %s1070_s11 = smov 128   ;;  %s1071_s18 = smov 8  }
  0x29   : > { %771 = dma.hbm_to_vmem [thread:$0]  (!%p1172_p11), %s1426_s1, 512, %s1165_s26, [#allocation6], %s1070_s11, %s1070_s11, %s1071_s18  }
  0x2a   : > { %s922_s4 = scalar_lea.hbm %s1427_s2, 16 }
  0x2b   : > { %p923_p1 = scmp.ne.s32.totalorder %s1427_s2, %s922_s4  ;;  %p929_p10 = scmp.lt.u32.totalorder %s922_s4, %s1427_s2 }
  0x2d   : > { %p925_p4 = pnand %p923_p1, %p896_p13 }
  0x2f   : > { %p926_p6 = pneg %p925_p4 }
  0x31   : > { %p931_p3 = pnand %p929_p10, %p926_p6 }
  0x33   : > { %934 = shalt.err (!%p931_p3)
}
  0x34   : > { %s935_s26 = scalar_lea.vmem %s1176_s29, 16  ;;  %s942_s9 = scalar_lea.vmem %s1176_s29, 32 }
  0x35   : > { %p936_p5 = scmp.ne.s32.totalorder %s1176_s29, %s935_s26  ;;  %p943_p12 = scmp.lt.s32.totalorder %s1176_s29, %s1176_s29 }
  0x36   : > { %p944_p0 = scmp.lt.s32.totalorder %s942_s9, %s935_s26 }
  0x37   : > { %p938_p7 = pnand %p936_p5, %p896_p13 }
  0x38   : > { %p945_p1 = por %p944_p0, %p943_p12 }
  0x39   : > { %p939_p9 = pneg %p938_p7 }
  0x3b   : > { %p946_p4 = pnand %p945_p1, %p939_p9 }
  0x3d   : > { %949 = shalt.err (!%p946_p4)
}
  0x3e   : > { %774 = dma.hbm_to_vmem [thread:$0]  (!%p1172_p11), %s1427_s2, 16, %s1176_s29, [#allocation6]  }
  0x3f   : > { %s32_s18 = sadd.s32 1, %s1062_s16  ;;  %s41_s19 = sadd.s32 1, %s1054_s14 }
  0x40   : > { %p34_p13 = scmp.ge.s32.totalorder %s32_s18, 2  ;;  %p48_p6 = scmp.ne.s32.totalorder %s1054_s14, %s1050_s13 }
  0x41   : > { %p49_p10 = scmp.eq.s32.totalorder %s1066_s17, 0  ;;  %p785_p3 = scmp.lt.s32.totalorder %s1066_s17, 2 }
  0x42   : > { %s1452_s18 = smov (%p34_p13, %s32_s18), 0  ;;  %p1241_p7 = por %p1145_p2, %p48_p6 }
  0x43   : > { %p50_p5 = por %p49_p10, %p48_p6  ;;  %s36_s25 = ssub.s32 %s1062_s16, %s1452_s18 }
  0x44   : > { %s1439_s27 = scalar_select %p1241_p7, 1, 0 }
  0x45   : > { %s172_s28 = sand.u32 1, %s1054_s14   ;;  %p39_p9 = scmp.eq.s32.totalorder %s36_s25, 0 }
  0x46   : > { %s719_s29 = sshll.u32 %s172_s28, 3  ;;  %s720_s30 = sshll.u32 %s1062_s16, 7 }
  0x47   : > { %s1250_s4 = scalar_select %p39_p9, %s1054_s14, %s41_s19  }
  0x48   : > { %s1255_s7 = scalar_lea.hbm %s1425_s0, %s720_s30  ;;  %s176_s21 = scalar_lea.vmem [#allocation2], %s719_s29 }
  0x49   : > { %s184_s8 = sshll.u32 %s176_s21, 4  ;;  %p1259_p2 = pnand %p785_p3, %p50_p5  ;;  %s1263_s8 = int_to_ptr.vmem [resolvable:$true] %s184_s8 }
  0x4a   : > { %s173_s9 = scalar_lea.sflag [#allocation3], %s172_s28  ;;  %s950_s10 = scalar_lea.hbm %s1255_s7, 128 }
  0x4b   : > { %p951_p11 = scmp.ne.s32.totalorder %s1255_s7, %s950_s10  ;;  %p952_p12 = pneg %p1259_p2 }
  0x4c   : > { %s955_s25 = scalar_lea.hbm %s1425_s0, 256  ;;  %p956_p4 = scmp.lt.u32.totalorder %s1255_s7, %s1425_s0 }
  0x4d   : > { %p953_p0 = pnand %p952_p12, %p951_p11  ;;  %p957_p13 = scmp.lt.u32.totalorder %s955_s25, %s950_s10 }
  0x4e   : > { %p959_p10 = scmp.lt.u32.totalorder %s950_s10, %s1255_s7 }
  0x4f   : > { %p954_p1 = pneg %p953_p0  ;;  %p958_p6 = por %p957_p13, %p956_p4 }
  0x51   : > { %p960_p3 = por %p959_p10, %p958_p6 }
  0x53   : > { %p961_p5 = pnand %p960_p3, %p954_p1 }
  0x55   : > { %964 = shalt.err (!%p961_p5)
}
  0x56   : > { %s965_s28 = scalar_lea.vmem %s1263_s8, 128  ;;  %s1072_s5 = smov [#allocation2]  }
  0x57   : > { %p966_p9 = scmp.ne.s32.totalorder %s1263_s8, %s965_s28  ;;  %s970_s6 = sshll.u32 %s1072_s5, 4  ;;  %s971_s6 = int_to_ptr.vmem [resolvable:$false] %s970_s6 }
  0x58   : > { %s972_s21 = scalar_lea.vmem %s971_s6, 256  ;;  %p973_p7 = scmp.lt.s32.totalorder %s1263_s8, %s971_s6 }
  0x59   : > { %p968_p11 = pnand %p966_p9, %p952_p12  ;;  %p974_p4 = scmp.lt.s32.totalorder %s972_s21, %s965_s28 }
  0x5b   : > { %p969_p0 = pneg %p968_p11  ;;  %p975_p13 = por %p974_p4, %p973_p7 }
  0x5d   : > { %p976_p6 = pnand %p975_p13, %p969_p0 }
  0x5f   : > { %979 = shalt.err (!%p976_p6)
}
  0x60   : > { %778 = dma.hbm_to_vmem [thread:$0]  (!%p1259_p2), %s1255_s7, 128, %s1263_s8, %s173_s9  }
  0x61   : > { %193 = sbr.rel (%p1161_p8) target bundleno = 935 (0x3a7), region = 32  ;;  %s1293_s10 = sand.u32 (!%p1161_p8), 1, %s1050_s13  }
  0x62   : > { %s722_s11 = sshll.u32 (!%p1161_p8), %s1293_s10, 3  ;;  %s196_s19 = scalar_lea.sflag (!%p1161_p8), [#allocation3], %s1293_s10 }
  0x63   : > { %s199_s25 = scalar_lea.vmem (!%p1161_p8), [#allocation2], %s722_s11  ;;  %p1441_p7 = scmp.ne.s32.totalorder (!%p1161_p8), %s1435_s22, 0 }
  0x68   : > { %1033 = dma.done.wait (%p1441_p7), %s196_s19, 128  }
  0x69   : > { %1035 = vsyncadd (%p1441_p7), %s196_s19, 4294967168  ;;  %p1442_p12 = scmp.ne.s32.totalorder %s1433_s20, 0 }
  0x6b   : > { %1037 = dma.done.wait (%p1442_p12), [#allocation6], 528  }
  0x6c   : > { %1039 = vsyncadd (%p1442_p12), [#allocation6], 4294966768  ;;  %v1073_v0 = vmov 0.0|0.0   ;;  %vm1074_vm0 = vmmov 0   ;;  %v1075_v1 = vmov 0.0   ;;  %v231_v2 = vld [vmem:[#allocation5] sm:$0xff] }
  0x6d   : > { %750 = vmatprep.subr.bf16.mxu0 %v1073_v0  ;;  %747 = vmatprep.mubr.msk.f32.mxu0 %vm1074_vm0, %v1075_v1  ;;  %v232_v3 = vld [vmem:[#allocation5 + $0x8] sm:$0xff]  ;;  %v233_v5 = vld [vmem:[#allocation5 + $0x10] sm:$0xff]  ;;  %v234_v6 = vld [vmem:[#allocation5 + $0x18] sm:$0xff]  ;;  %vm242_vm1 = vcmask 261120   ;;  %s1076_s20 = smov 104   ;;  %s1077_s22 = smov 120  }
  0x6e   : > { %v751_v4 = vpack.c.bf16 %v232_v3, %v231_v2  ;;  %v754_v7 = vpack.c.bf16 %v234_v6, %v233_v5  ;;  %v230_v8 = vld [vmem:[%s199_s25] sm:$0xff]  ;;  %v726_v9 = vld [vmem:[#allocation7] ss:$0 sm:$0xff]  ;;  %s1078_s24 = smov 96   ;;  %s1079_s7 = smov 112   ;;  %vm333_vm2 = vcmask 64512  }
  0x6f   : > { %s1080_s8 = smov 80   ;;  %s1081_s26 = smov 88  }
  0x70   : > { %752 = vmatpush3.bf16.msra.mxu0 %v751_v4  ;;  %s1082_s9 = smov 72   ;;  %s1083_s29 = smov 64  }
  0x71   : > { %753 = vmatprep.subr.bf16.mxu0 %v1073_v0  ;;  %s725_s30 = sshll.u32 %s1293_s10, 5  ;;  %s733_s6 = sshll.u32 %s1058_s15, 9 }
  0x72   : > { %s229_s28 = scalar_lea.vmem [#allocation8], %s725_s30  ;;  %s1375_s19 = scalar_lea.hbm %s1428_s3, %s733_s6 }
  0x73   : > { %s610_s5 = sshll.u32 %s229_s28, 4  ;;  %s596_s15 = scalar_lea.sflag [#allocation4], %s1293_s10  ;;  %s1368_s5 = int_to_ptr.vmem [resolvable:$true] %s610_s5 }
  0x74   : > { %755 = vmatpush3.bf16.msra.mxu0 %v754_v7  ;;  %s980_s25 = scalar_lea.vmem %s1368_s5, 512  ;;  %p1443_p2 = scmp.ne.s32.totalorder %s1439_s27, 0 }
  0x75   : > { %p981_p8 = scmp.ne.s32.totalorder %s1368_s5, %s980_s25 }
  0x77   : > { %748 = vmatmul.mubr.msk.f32.vlgmr.msra.gmra.mrb[0].mxu0 %vm242_vm1, %v230_v8  ;;  %p982_p1 = pnand %p981_p8, %p1443_p2 }
  0x79   : > { %p983_p10 = pneg %p982_p1 }
 0x14a   : > { %v312_v10 = vpop.f32.mrb[0].mxu0 }
 0x14b   : > { %v1305_v11 = vadd.f32 %v726_v9, %v312_v10  ;;  %v749_v12 = vpop.f32.mrb[1].mxu0 }
 0x14d   : > { %323 = vrot.lane.b32.xlu1 %v1305_v11, %s1076_s20  ;;  %317 = vrot.lane.b32.xlu0 %v1305_v11, %s1077_s22 }
 0x151   : > { %326 = vrot.lane.b32.xlu1 %v1305_v11, %s1078_s24  ;;  %320 = vrot.lane.b32.xlu0 %v1305_v11, %s1079_s7 }
 0x155   : > { %365 = vrot.lane.b32.xlu1 %v1305_v11, %s1080_s8  ;;  %346 = vrot.lane.b32.xlu0 %v1305_v11, %s1081_s26 }
 0x159   : > { %384 = vrot.lane.b32.xlu0 %v1305_v11, %s1082_s9 }
 0x1bf   : > { %v324_v13 = vpop.permute.xlu1 %323  ;;  %v318_v14 = vpop.permute.xlu0 %317 }
 0x1c3   : > { %v327_v15 = vpop.permute.xlu1 %326  ;;  %v321_v16 = vpop.permute.xlu0 %320 }
 0x1c4   : > { %v329_v17 = vmul.f32 %v327_v15, %v1305_v11  ;;  %v330_v18 = vmul.f32 %v327_v15, %v318_v14  ;;  %v332_v21 = vmul.f32 %v327_v15, %v324_v13  ;;  %v331_v22 = vmul.f32 %v327_v15, %v321_v16 }
 0x1c6   : > { %v334_v19 = vsel %vm333_vm2, %v329_v17, 0.0  ;;  %v337_v20 = vsel %vm333_vm2, %v330_v18, 0.0  ;;  %v343_v24 = vsel %vm333_vm2, %v332_v21, 0.0  ;;  %v340_v25 = vsel %vm333_vm2, %v331_v22, 0.0 }
 0x1c7   : > { %335 = vadd.xlane.f32.xlu1 %v334_v19  ;;  %338 = vadd.xlane.f32.xlu0 %v337_v20  ;;  %v347_v23 = vpop.permute.xlu0 %346  ;;  %v366_v32 = vpop.permute.xlu1 %365 }
 0x1c8   : > { %v350_v26 = vmul.f32 %v347_v23, %v318_v14  ;;  %v349_v27 = vmul.f32 %v347_v23, %v1305_v11  ;;  %v352_v30 = vmul.f32 %v347_v23, %v324_v13  ;;  %v351_v31 = vmul.f32 %v347_v23, %v321_v16 }
 0x1c9   : > { %v369_v35 = vmul.f32 %v366_v32, %v318_v14  ;;  %v368_v36 = vmul.f32 %v366_v32, %v1305_v11  ;;  %v371_v39 = vmul.f32 %v366_v32, %v324_v13  ;;  %v370_v40 = vmul.f32 %v366_v32, %v321_v16 }
 0x1ca   : > { %v356_v28 = vsel %vm333_vm2, %v350_v26, 0.0  ;;  %v353_v29 = vsel %vm333_vm2, %v349_v27, 0.0  ;;  %v362_v33 = vsel %vm333_vm2, %v352_v30, 0.0  ;;  %v359_v34 = vsel %vm333_vm2, %v351_v31, 0.0 }
 0x1cb   : > { %344 = vadd.xlane.f32.xlu1 %v343_v24  ;;  %341 = vadd.xlane.f32.xlu0 %v340_v25  ;;  %v375_v37 = vsel %vm333_vm2, %v369_v35, 0.0  ;;  %v372_v38 = vsel %vm333_vm2, %v368_v36, 0.0  ;;  %v385_v41 = vpop.permute.xlu0 %384  ;;  %v381_v42 = vsel %vm333_vm2, %v371_v39, 0.0  ;;  %v378_v43 = vsel %vm333_vm2, %v370_v40, 0.0 }
 0x1cc   : > { %v388_v44 = vmul.f32 %v385_v41, %v318_v14  ;;  %v387_v45 = vmul.f32 %v385_v41, %v1305_v11  ;;  %v390_v48 = vmul.f32 %v385_v41, %v324_v13  ;;  %v389_v49 = vmul.f32 %v385_v41, %v321_v16 }
 0x1ce   : > { %v394_v46 = vsel %vm333_vm2, %v388_v44, 0.0  ;;  %v391_v47 = vsel %vm333_vm2, %v387_v45, 0.0  ;;  %v400_v50 = vsel %vm333_vm2, %v390_v48, 0.0  ;;  %v397_v51 = vsel %vm333_vm2, %v389_v49, 0.0 }
 0x1cf   : > { %357 = vadd.xlane.f32.xlu1 %v356_v28  ;;  %354 = vadd.xlane.f32.xlu0 %v353_v29 }
 0x1d3   : > { %363 = vadd.xlane.f32.xlu1 %v362_v33  ;;  %360 = vadd.xlane.f32.xlu0 %v359_v34 }
 0x1d7   : > { %376 = vadd.xlane.f32.xlu1 %v375_v37  ;;  %373 = vadd.xlane.f32.xlu0 %v372_v38 }
 0x1db   : > { %382 = vadd.xlane.f32.xlu1 %v381_v42  ;;  %379 = vadd.xlane.f32.xlu0 %v378_v43 }
 0x1df   : > { %395 = vadd.xlane.f32.xlu1 %v394_v46  ;;  %392 = vadd.xlane.f32.xlu0 %v391_v47 }
 0x1e3   : > { %401 = vadd.xlane.f32.xlu1 %v400_v50  ;;  %398 = vadd.xlane.f32.xlu0 %v397_v51 }
 0x254   : > { %v336_v52 = vpop.xlane.xlu1 %335  ;;  %v339_v53 = vpop.xlane.xlu0 %338 }
 0x258   : > { %v345_v54 = vpop.xlane.xlu1 %344  ;;  %v342_v55 = vpop.xlane.xlu0 %341 }
 0x25c   : > { %v358_v56 = vpop.xlane.xlu1 %357  ;;  %v355_v57 = vpop.xlane.xlu0 %354 }
 0x25d   : > { %v404_v0 = vmax.f32 %v339_v53, %v358_v56  ;;  %v403_v1 = vmax.f32 %v336_v52, %v355_v57 }
 0x260   : > { %v364_v58 = vpop.xlane.xlu1 %363  ;;  %v361_v59 = vpop.xlane.xlu0 %360 }
 0x261   : > { %v406_v4 = vmax.f32 %v345_v54, %v364_v58  ;;  %v405_v9 = vmax.f32 %v342_v55, %v361_v59 }
 0x264   : > { %v377_v60 = vpop.xlane.xlu1 %376  ;;  %v374_v61 = vpop.xlane.xlu0 %373 }
 0x265   : > { %v408_v2 = vmax.f32 %v404_v0, %v377_v60  ;;  %v407_v3 = vmax.f32 %v403_v1, %v374_v61 }
 0x268   : > { %v383_v62 = vpop.xlane.xlu1 %382  ;;  %v380_v63 = vpop.xlane.xlu0 %379 }
 0x269   : > { %v410_v10 = vmax.f32 %v406_v4, %v383_v62  ;;  %v409_v16 = vmax.f32 %v405_v9, %v380_v63 }
 0x26c   : > { %v396_v5 = vpop.xlane.xlu1 %395  ;;  %v393_v6 = vpop.xlane.xlu0 %392 }
 0x26d   : > { %v412_v7 = vmax.f32 %v408_v2, %v396_v5  ;;  %v411_v8 = vmax.f32 %v407_v3, %v393_v6 }
 0x26f   : > { %v416_v12 = vsub.f32 %v339_v53, %v412_v7  ;;  %v428_v13 = vsub.f32 %v358_v56, %v412_v7  ;;  %v440_v14 = vsub.f32 %v377_v60, %v412_v7  ;;  %v452_v15 = vsub.f32 %v396_v5, %v412_v7 }
 0x270   : > { %v415_v17 = vsub.f32 %v336_v52, %v411_v8  ;;  %v427_v18 = vsub.f32 %v355_v57, %v411_v8  ;;  %v439_v19 = vsub.f32 %v374_v61, %v411_v8  ;;  %v402_v20 = vpop.xlane.xlu1 %401  ;;  %v399_v21 = vpop.xlane.xlu0 %398  ;;  %v451_v27 = vsub.f32 %v393_v6, %v411_v8 }
 0x271   : > { %v421_v22 = vmul.f32 1.442695, %v416_v12  ;;  %v433_v23 = vmul.f32 1.442695, %v428_v13  ;;  %v445_v24 = vmul.f32 1.442695, %v440_v14  ;;  %v414_v25 = vmax.f32 %v410_v10, %v402_v20 }
 0x272   : > { %v457_v26 = vmul.f32 1.442695, %v452_v15  ;;  %v419_v28 = vmul.f32 1.442695, %v415_v17  ;;  %v413_v30 = vmax.f32 %v409_v16, %v399_v21  ;;  %v431_v31 = vmul.f32 1.442695, %v427_v18 }
 0x273   : > { %854 = vpow2.f32 %v421_v22  ;;  %v418_v29 = vsub.f32 %v345_v54, %v414_v25  ;;  %v430_v32 = vsub.f32 %v364_v58, %v414_v25  ;;  %v443_v33 = vmul.f32 1.442695, %v439_v19 }
 0x274   : > { %856 = vpow2.f32 %v433_v23  ;;  %v442_v34 = vsub.f32 %v383_v62, %v414_v25  ;;  %v455_v35 = vmul.f32 1.442695, %v451_v27  ;;  %v454_v36 = vsub.f32 %v402_v20, %v414_v25 }
 0x275   : > { %858 = vpow2.f32 %v445_v24  ;;  %v425_v37 = vmul.f32 1.442695, %v418_v29  ;;  %v417_v38 = vsub.f32 %v342_v55, %v413_v30  ;;  %v437_v39 = vmul.f32 1.442695, %v430_v32 }
 0x276   : > { %860 = vpow2.f32 %v457_v26  ;;  %v429_v40 = vsub.f32 %v361_v59, %v413_v30  ;;  %v449_v41 = vmul.f32 1.442695, %v442_v34  ;;  %v461_v42 = vmul.f32 1.442695, %v454_v36 }
 0x277   : > { %862 = vpow2.f32 %v419_v28  ;;  %v441_v43 = vsub.f32 %v380_v63, %v413_v30  ;;  %v423_v44 = vmul.f32 1.442695, %v417_v38  ;;  %v453_v46 = vsub.f32 %v399_v21, %v413_v30 }
 0x278   : > { %864 = vpow2.f32 %v431_v31  ;;  %v435_v45 = vmul.f32 1.442695, %v429_v40 }
 0x279   : > { %866 = vpow2.f32 %v443_v33  ;;  %v447_v49 = vmul.f32 1.442695, %v441_v43  ;;  %v459_v53 = vmul.f32 1.442695, %v453_v46 }
 0x27a   : > { %868 = vpow2.f32 %v455_v35 }
 0x27b   : > { %870 = vpow2.f32 %v425_v37 }
 0x27c   : > { %872 = vpow2.f32 %v437_v39 }
 0x27d   : > { %v855_v47 = vpop.eup %854  ;;  %874 = vpow2.f32 %v449_v41 }
 0x27e   : > { %v857_v48 = vpop.eup %856  ;;  %876 = vpow2.f32 %v461_v42 }
 0x27f   : > { %v859_v50 = vpop.eup %858  ;;  %v464_v51 = vadd.f32 %v857_v48, %v855_v47  ;;  %878 = vpow2.f32 %v423_v44 }
 0x280   : > { %v861_v52 = vpop.eup %860  ;;  %880 = vpow2.f32 %v435_v45 }
 0x281   : > { %v863_v54 = vpop.eup %862  ;;  %v468_v55 = vadd.f32 %v859_v50, %v464_v51  ;;  %882 = vpow2.f32 %v447_v49 }
 0x282   : > { %v865_v56 = vpop.eup %864  ;;  %884 = vpow2.f32 %v459_v53 }
 0x283   : > { %v867_v57 = vpop.eup %866  ;;  %v472_v58 = vadd.f32 %v861_v52, %v468_v55  ;;  %v463_v59 = vadd.f32 %v865_v56, %v863_v54 }
 0x284   : > { %v869_v60 = vpop.eup %868 }
 0x285   : > { %v871_v61 = vpop.eup %870  ;;  %886 = vrcp.f32 %v472_v58  ;;  %v467_v62 = vadd.f32 %v867_v57, %v463_v59 }
 0x286   : > { %v873_v63 = vpop.eup %872 }
 0x287   : > { %v875_v0 = vpop.eup %874  ;;  %v471_v1 = vadd.f32 %v869_v60, %v467_v62  ;;  %v466_v2 = vadd.f32 %v873_v63, %v871_v61 }
 0x288   : > { %v877_v3 = vpop.eup %876 }
 0x289   : > { %v879_v4 = vpop.eup %878  ;;  %888 = vrcp.f32 %v471_v1  ;;  %v470_v5 = vadd.f32 %v875_v0, %v466_v2 }
 0x28a   : > { %v881_v6 = vpop.eup %880 }
 0x28b   : > { %v474_v7 = vadd.f32 %v877_v3, %v470_v5  ;;  %v465_v8 = vadd.f32 %v881_v6, %v879_v4  ;;  %v883_v9 = vpop.eup %882 }
 0x28c   : > { %v885_v12 = vpop.eup %884 }
 0x28d   : > { %890 = vrcp.f32 %v474_v7  ;;  %v469_v10 = vadd.f32 %v883_v9, %v465_v8 }
 0x28f   : > { %v887_v13 = vpop.eup %886  ;;  %v473_v14 = vadd.f32 %v885_v12, %v469_v10 }
 0x290   : > { %v492_v15 = vmul.f32 %v887_v13, %v857_v48  ;;  %v484_v16 = vmul.f32 %v887_v13, %v855_v47  ;;  %v500_v26 = vmul.f32 %v887_v13, %v859_v50  ;;  %v508_v37 = vmul.f32 %v887_v13, %v861_v52 }
 0x291   : > { %892 = vrcp.f32 %v473_v14 }
 0x292   : > { %v496_v17 = vmul.f32 %v492_v15, %v1305_v11  ;;  %v504_v31 = vmul.f32 %v500_v26, %v1305_v11  ;;  %v512_v39 = vmul.f32 %v508_v37, %v1305_v11  ;;  %v488_v51 = vmul.f32 %v484_v16, %v1305_v11 }
 0x293   : > { %v889_v18 = vpop.eup %888 }
 0x294   : > { %521 = vrot.lane.b32.xlu1 %v496_v17, %s1077_s22  ;;  %v491_v19 = vmul.f32 %v889_v18, %v865_v56  ;;  %v483_v20 = vmul.f32 %v889_v18, %v863_v54  ;;  %v499_v32 = vmul.f32 %v889_v18, %v867_v57  ;;  %v507_v40 = vmul.f32 %v889_v18, %v869_v60 }
 0x296   : > { %v495_v21 = vmul.f32 %v491_v19, %v1305_v11  ;;  %v503_v34 = vmul.f32 %v499_v32, %v1305_v11  ;;  %v511_v42 = vmul.f32 %v507_v40, %v1305_v11  ;;  %v487_v55 = vmul.f32 %v483_v20, %v1305_v11 }
 0x297   : > { %v891_v22 = vpop.eup %890 }
 0x298   : > { %519 = vrot.lane.b32.xlu0 %v495_v21, %s1077_s22  ;;  %v494_v23 = vmul.f32 %v891_v22, %v873_v63  ;;  %v486_v24 = vmul.f32 %v891_v22, %v871_v61  ;;  %v502_v33 = vmul.f32 %v891_v22, %v875_v0  ;;  %v510_v41 = vmul.f32 %v891_v22, %v877_v3 }
 0x29a   : > { %v498_v25 = vmul.f32 %v494_v23, %v1305_v11  ;;  %v506_v35 = vmul.f32 %v502_v33, %v1305_v11  ;;  %v514_v43 = vmul.f32 %v510_v41, %v1305_v11  ;;  %v490_v56 = vmul.f32 %v486_v24, %v1305_v11 }
 0x29b   : > { %v893_v27 = vpop.eup %892 }
 0x29c   : > { %525 = vrot.lane.b32.xlu0 %v498_v25, %s1077_s22  ;;  %v493_v28 = vmul.f32 %v893_v27, %v881_v6  ;;  %v485_v29 = vmul.f32 %v893_v27, %v879_v4  ;;  %v501_v36 = vmul.f32 %v893_v27, %v883_v9  ;;  %v509_v44 = vmul.f32 %v893_v27, %v885_v12 }
 0x29e   : > { %v497_v30 = vmul.f32 %v493_v28, %v1305_v11  ;;  %v505_v38 = vmul.f32 %v501_v36, %v1305_v11  ;;  %v513_v45 = vmul.f32 %v509_v44, %v1305_v11  ;;  %v489_v63 = vmul.f32 %v485_v29, %v1305_v11 }
 0x2a0   : > { %523 = vrot.lane.b32.xlu1 %v497_v30, %s1077_s22  ;;  %541 = vrot.lane.b32.xlu0 %v504_v31, %s1079_s7 }
 0x2a4   : > { %539 = vrot.lane.b32.xlu1 %v503_v34, %s1079_s7  ;;  %545 = vrot.lane.b32.xlu0 %v506_v35, %s1079_s7 }
 0x2a8   : > { %543 = vrot.lane.b32.xlu1 %v505_v38, %s1079_s7  ;;  %561 = vrot.lane.b32.xlu0 %v512_v39, %s1076_s20 }
 0x2ac   : > { %559 = vrot.lane.b32.xlu1 %v511_v42, %s1076_s20  ;;  %565 = vrot.lane.b32.xlu0 %v514_v43, %s1076_s20 }
 0x2b0   : > { %563 = vrot.lane.b32.xlu1 %v513_v45, %s1076_s20  ;;  %s1084_s20 = smov [#allocation8]  }
 0x2b1   : > { %s984_s22 = sshll.u32 %s1084_s20, 4  ;;  %s985_s22 = int_to_ptr.vmem [resolvable:$false] %s984_s22 }
 0x2b2   : > { %s986_s24 = scalar_lea.vmem %s985_s22, 1024  ;;  %p987_p3 = scmp.lt.s32.totalorder %s1368_s5, %s985_s22 }
 0x2b3   : > { %p988_p5 = scmp.lt.s32.totalorder %s986_s24, %s980_s25 }
 0x2b5   : > { %p989_p9 = por %p988_p5, %p987_p3 }
 0x2b7   : > { %p990_p11 = pnand %p989_p9, %p983_p10 }
 0x306   : > { %v522_v47 = vpop.permute.xlu1 %521 }
 0x307   : > { %v532_v54 = vadd.f32 %v522_v47, %v488_v51 }
 0x30a   : > { %v520_v46 = vpop.permute.xlu0 %519 }
 0x30b   : > { %v531_v60 = vadd.f32 %v520_v46, %v487_v55 }
 0x30e   : > { %v526_v48 = vpop.permute.xlu0 %525 }
 0x30f   : > { %v534_v61 = vadd.f32 %v526_v48, %v490_v56 }
 0x312   : > { %v524_v49 = vpop.permute.xlu1 %523  ;;  %v542_v50 = vpop.permute.xlu0 %541 }
 0x313   : > { %v552_v57 = vadd.f32 %v542_v50, %v532_v54  ;;  %v533_v4 = vadd.f32 %v524_v49, %v489_v63 }
 0x316   : > { %v540_v52 = vpop.permute.xlu1 %539  ;;  %v546_v53 = vpop.permute.xlu0 %545 }
 0x317   : > { %v551_v0 = vadd.f32 %v540_v52, %v531_v60  ;;  %v554_v1 = vadd.f32 %v546_v53, %v534_v61 }
 0x31a   : > { %v544_v58 = vpop.permute.xlu1 %543  ;;  %v562_v59 = vpop.permute.xlu0 %561 }
 0x31b   : > { %v572_v62 = vadd.f32 %v562_v59, %v552_v57  ;;  %v553_v7 = vadd.f32 %v544_v58, %v533_v4 }
 0x31d   : > { %581 = vrot.lane.b32.xlu0 %v572_v62, %s1083_s29 }
 0x31e   : > { %v560_v2 = vpop.permute.xlu1 %559  ;;  %v566_v3 = vpop.permute.xlu0 %565 }
 0x31f   : > { %v571_v5 = vadd.f32 %v560_v2, %v551_v0  ;;  %v574_v6 = vadd.f32 %v566_v3, %v554_v1 }
 0x321   : > { %579 = vrot.lane.b32.xlu1 %v571_v5, %s1083_s29  ;;  %585 = vrot.lane.b32.xlu0 %v574_v6, %s1083_s29 }
 0x322   : > { %v564_v8 = vpop.permute.xlu1 %563 }
 0x323   : > { %v573_v9 = vadd.f32 %v564_v8, %v553_v7 }
 0x325   : > { %583 = vrot.lane.b32.xlu1 %v573_v9, %s1083_s29 }
 0x38f   : > { %v582_v11 = vpop.permute.xlu0 %581 }
 0x390   : > { %592 = vst.msk [vmem:[%s229_s28 + $0x8] sm:$0xff] %vm333_vm2, %v582_v11 }
 0x393   : > { %v580_v10 = vpop.permute.xlu1 %579  ;;  %v586_v12 = vpop.permute.xlu0 %585 }
 0x394   : > { %591 = vst.msk [vmem:[%s229_s28] sm:$0xff] %vm333_vm2, %v580_v10  ;;  %594 = vst.msk [vmem:[%s229_s28 + $0x18] sm:$0xff] %vm333_vm2, %v586_v12 }
 0x397   : > { %v584_v13 = vpop.permute.xlu1 %583 }
 0x398   : > { %593 = vst.msk [vmem:[%s229_s28 + $0x10] sm:$0xff] %vm333_vm2, %v584_v13 }
 0x399   : > { %993 = shalt.err (!%p990_p11)
}
 0x39a   : > { %s994_s7 = scalar_lea.hbm %s1375_s19, 512  ;;  %s998_s9 = scalar_lea.hbm %s1428_s3, 1024 }
 0x39b   : > { %p995_p0 = scmp.ne.s32.totalorder %s1375_s19, %s994_s7  ;;  %p999_p6 = scmp.lt.u32.totalorder %s1375_s19, %s1428_s3 }
 0x39c   : > { %p1000_p7 = scmp.lt.u32.totalorder %s998_s9, %s994_s7  ;;  %p1002_p8 = scmp.lt.u32.totalorder %s994_s7, %s1375_s19 }
 0x39d   : > { %p996_p4 = pnand %p995_p0, %p1443_p2 }
 0x39e   : > { %p1001_p12 = por %p1000_p7, %p999_p6 }
 0x39f   : > { %p997_p13 = pneg %p996_p4 }
 0x3a0   : > { %p1003_p1 = por %p1002_p8, %p1001_p12 }
 0x3a2   : > { %p1004_p10 = pnand %p1003_p1, %p997_p13 }
 0x3a4   : > { %1007 = shalt.err (!%p1004_p10)
}
 0x3a5   : > { %s1085_s28 = smov 128   ;;  %s1086_s6 = smov 8  }
 0x3a6   : > { %766 = dma.vmem_to_hbm [thread:$0]  (%p1443_p2), %s1368_s5, 512, %s1375_s19, %s596_s15, %s1085_s28, %s1085_s28, %s1086_s6  }
 0x3a7 PF: > { %s625_s21 = sand.u32 1, %s1046_s12   ;;  %p1444_p3 = scmp.ne.s32.totalorder %s1436_s23, 0 }
 0x3a8   : > { %p1445_p5 = scmp.ge.s32.totalorder %s1066_s17, 2  ;;  %s626_s11 = scalar_lea.sflag [#allocation4], %s625_s21 }
 0x3aa   : > { %p780_p9 = pnand %p1445_p5, %p1444_p3 }
 0x3ac   : > { %1041 = dma.done.wait (!%p780_p9), %s626_s11, 512  }
 0x3ad   : > { %1043 = vsyncadd (!%p780_p9), %s626_s11, 4294966784  ;;  %s20_s17 = sadd.s32 1, %s1066_s17   ;;  %s1446_s12 = smov %s1050_s13 }
 0x3ae   : > { %p17_p11 = scmp.ge.s32.totalorder %s20_s17, 4   ;;  %s1447_s13 = smov %s1054_s14 }
 0x3af   : > { %s1448_s14 = smov %s1250_s4  ;;  %s1449_s15 = smov %s1062_s16 }
 0x3b0   : > { %s1450_s16 = smov %s1452_s18  ;;  %19 = sbr.rel (!%p17_p11) target bundleno = 7 (0x7), region = 85 }
 0x3b7   :  { %631 = vsyncpa [#allocation3], 1 }
 0x3b8   :  { %633 = vsyncpa [#allocation3 + $0x1], 1 }
 0x3b9   :  { %634 = vsyncpa [#allocation6], 1 }
 0x3ba   :  { %635 = vsyncpa [#allocation4], 1 }
 0x3bb   :  { %637 = vsyncpa [#allocation4 + $0x1], 1 }

// kernel: decoder_forward.25
= control target key start
LH: loop header
LB: loop body
LE: loop exit
PB: predicated region body
PF: predicated region fallthrough
CT: control target
= control target key end

     0   :  { %8 = vsyncpa [#allocation3], 0  ;;  %s407_s0 = inlined_call_operand.hbm [shape: f32[16,32], index: 0, kind: input, shape index: {}]   ;;  %s408_s1 = inlined_call_operand.hbm [shape: f32[32,128], index: 1, kind: input, shape index: {}]   ;;  %s409_s2 = inlined_call_operand.hbm [shape: f32[1,128], index: 2, kind: input, shape index: {}]   ;;  %s410_s3 = inlined_call_operand.hbm [shape: f32[16,128], index: 3, kind: output, shape index: {}]  }
   0x1   :  { %9 = vsyncpa [#allocation6], 0 }
   0x2   :  { %10 = vsyncpa [#allocation4], 0  ;;  %s317_s12 = smov [#allocation5]   ;;  %s318_s14 = smov [#allocation2]  }
   0x3   :  { %s28_s13 = sshll.u32 %s317_s12, 4  ;;  %s16_s15 = sshll.u32 %s318_s14, 4  ;;  %s29_s13 = int_to_ptr.vmem [resolvable:$true] %s28_s13  ;;  %s343_s15 = int_to_ptr.vmem [resolvable:$true] %s16_s15 }
   0x4   :  { %s223_s18 = scalar_lea.hbm %s408_s1, 512 }
   0x5   :  { %p224_p0 = scmp.ne.s32.totalorder %s408_s1, %s223_s18  ;;  %p227_p1 = scmp.lt.u32.totalorder %s223_s18, %s408_s1 }
   0x7   :  { %p229_p2 = pnand %p227_p1, %p224_p0 }
   0x9   :  { %232 = shalt.err (!%p229_p2)
}
   0xa   :  { %s233_s23 = scalar_lea.vmem %s29_s13, 512  ;;  %p238_p4 = scmp.lt.s32.totalorder %s29_s13, %s29_s13 }
   0xb   :  { %p234_p3 = scmp.ne.s32.totalorder %s29_s13, %s233_s23  ;;  %p239_p5 = scmp.lt.s32.totalorder %s233_s23, %s233_s23 }
   0xd   :  { %p240_p6 = por %p239_p5, %p238_p4 }
   0xf   :  { %p241_p7 = pnand %p240_p6, %p234_p3 }
  0x11   :  { %244 = shalt.err (!%p241_p7)
}
  0x12   :  { %s319_s24 = smov 128   ;;  %s320_s25 = smov 8  }
  0x13   :  { %34 = dma.hbm_to_vmem [thread:$0]  %s408_s1, 512, %s29_s13, [#allocation6], %s319_s24, %s319_s24, %s320_s25  }
  0x14   :  { %s245_s30 = scalar_lea.hbm %s407_s0, 256 }
  0x15   :  { %p246_p8 = scmp.ne.s32.totalorder %s407_s0, %s245_s30  ;;  %p249_p9 = scmp.lt.u32.totalorder %s245_s30, %s407_s0 }
  0x17   :  { %p251_p10 = pnand %p249_p9, %p246_p8 }
  0x19   :  { %254 = shalt.err (!%p251_p10)
}
  0x1a   :  { %s255_s8 = scalar_lea.vmem %s343_s15, 256  ;;  %p260_p12 = scmp.lt.s32.totalorder %s343_s15, %s343_s15 }
  0x1b   :  { %p256_p11 = scmp.ne.s32.totalorder %s343_s15, %s255_s8  ;;  %p261_p13 = scmp.lt.s32.totalorder %s255_s8, %s255_s8 }
  0x1d   :  { %p262_p0 = por %p261_p13, %p260_p12 }
  0x1f   :  { %p263_p1 = pnand %p262_p0, %p256_p11 }
  0x21   :  { %266 = shalt.err (!%p263_p1)
}
  0x22   :  { %22 = dma.hbm_to_vmem [thread:$0]  %s407_s0, 256, %s343_s15, [#allocation3], %s319_s24, %s319_s24, %s320_s25  }
  0x23   :  { %s321_s10 = smov [#allocation7]   ;;  %s267_s14 = scalar_lea.hbm %s409_s2, 16 }
  0x24   :  { %s41_s11 = sshll.u32 %s321_s10, 4  ;;  %p268_p2 = scmp.ne.s32.totalorder %s409_s2, %s267_s14  ;;  %s42_s11 = int_to_ptr.vmem [resolvable:$true] %s41_s11 }
  0x25   :  { %p271_p3 = scmp.lt.u32.totalorder %s267_s14, %s409_s2 }
  0x27   :  { %p273_p4 = pnand %p271_p3, %p268_p2 }
  0x29   :  { %276 = shalt.err (!%p273_p4)
}
  0x2a   :  { %s277_s20 = scalar_lea.vmem %s42_s11, 16  ;;  %s281_s0 = scalar_lea.vmem %s42_s11, 32 }
  0x2b   :  { %p278_p5 = scmp.ne.s32.totalorder %s42_s11, %s277_s20  ;;  %p282_p6 = scmp.lt.s32.totalorder %s42_s11, %s42_s11 }
  0x2c   :  { %p283_p7 = scmp.lt.s32.totalorder %s281_s0, %s277_s20 }
  0x2e   :  { %p284_p8 = por %p283_p7, %p282_p6 }
  0x30   :  { %p285_p9 = pnand %p284_p8, %p278_p5 }
  0x32   :  { %288 = shalt.err (!%p285_p9)
}
  0x33   :  { %44 = dma.hbm_to_vmem [thread:$0]  %s409_s2, 16, %s42_s11, [#allocation6]  }
  0x34   :  { %311 = dma.done.wait [#allocation3], 256  }
  0x35   :  { %312 = vsyncadd [#allocation3], 4294967040 }
  0x36   :  { %313 = dma.done.wait [#allocation6], 528  }
  0x37   :  { %314 = vsyncadd [#allocation6], 4294966768  ;;  %vm68_vm0 = vcmask 261120   ;;  %v64_v0 = vld [vmem:[#allocation5] sm:$0xff]  ;;  %v65_v1 = vld [vmem:[#allocation5 + $0x8] sm:$0xff]  ;;  %s322_s2 = smov [#allocation8]  }
  0x38   :  { %v66_v2 = vld [vmem:[#allocation5 + $0x10] sm:$0xff]  ;;  %v208_v3 = vpack.c.bf16 %v65_v1, %v64_v0  ;;  %v67_v4 = vld [vmem:[#allocation5 + $0x18] sm:$0xff]  ;;  %v190_v9 = vld [vmem:[#allocation7] ss:$0 sm:$0xff]  ;;  %s175_s22 = sshll.u32 %s322_s2, 4  ;;  %s176_s22 = int_to_ptr.vmem [resolvable:$true] %s175_s22 }
  0x39   :  { %v62_v5 = vld [vmem:[#allocation2] sm:$0xff]  ;;  %v212_v6 = vpack.c.bf16 %v67_v4, %v66_v2  ;;  %v63_v7 = vld [vmem:[#allocation2 + $0x8] sm:$0xff]  ;;  %s289_s23 = scalar_lea.vmem %s176_s22, 256  ;;  %p294_p11 = scmp.lt.s32.totalorder %s176_s22, %s176_s22 }
  0x3a   :  { %205 = vmatprep.mubr.msk.f32.mxu0 %vm68_vm0, %v62_v5  ;;  %209 = vmatprep.subr.bf16.mxu0 %v208_v3  ;;  %p290_p10 = scmp.ne.s32.totalorder %s176_s22, %s289_s23  ;;  %p295_p12 = scmp.lt.s32.totalorder %s289_s23, %s289_s23 }
  0x3b   :  { %211 = vmatpush3.bf16.msra.mxu0 %v208_v3 }
  0x3c   :  { %213 = vmatprep.subr.bf16.mxu0 %v212_v6  ;;  %p296_p13 = por %p295_p12, %p294_p11 }
  0x3e   :  { %p297_p0 = pnand %p296_p13, %p290_p10 }
  0x3f   :  { %215 = vmatpush3.bf16.msra.mxu0 %v212_v6 }
  0x42   :  { %206 = vmatmul.mubr.msk.f32.vlgmr.msra.gmra.mrb[0].mxu0 %vm68_vm0, %v63_v7 }
 0x115   :  { %v207_v8 = vpop.f32.mrb[0].mxu0 }
 0x116   :  { %v141_v10 = vpop.f32.mrb[1].mxu0  ;;  %v167_v11 = vadd.f32 %v207_v8, %v190_v9 }
 0x117   :  { %v166_v12 = vadd.f32 %v190_v9, %v141_v10 }
 0x118   :  { %169 = vst [vmem:[#allocation8 + $0x8] sm:$0xff] %v167_v11 }
 0x119   :  { %168 = vst [vmem:[#allocation8] sm:$0xff] %v166_v12 }
 0x11a   :  { %300 = shalt.err (!%p297_p0)
}
 0x11b   :  { %s301_s28 = scalar_lea.hbm %s410_s3, 256 }
 0x11c   :  { %p302_p1 = scmp.ne.s32.totalorder %s410_s3, %s301_s28  ;;  %p305_p2 = scmp.lt.u32.totalorder %s301_s28, %s410_s3 }
 0x11e   :  { %p307_p3 = pnand %p305_p2, %p302_p1 }
 0x120   :  { %310 = shalt.err (!%p307_p3)
}
 0x121   :  { %181 = dma.vmem_to_hbm [thread:$0]  %s176_s22, 256, %s410_s3, [#allocation4], %s319_s24, %s319_s24, %s320_s25  }
 0x122   :  { %315 = dma.done.wait [#allocation4], 256  }
 0x123   :  { %316 = vsyncadd [#allocation4], 4294967040 }
 0x124   :  { %185 = vsyncpa [#allocation3], 1 }
 0x125   :  { %186 = vsyncpa [#allocation6], 1 }
 0x126   :  { %187 = vsyncpa [#allocation4], 1 }

</bundles_post_ra>
